<compile_context>
chip_gen: v7x
topology: tpu7x:2x2x1
jax: 0.10.0
libtpu: 0.0.40
codegen_flags: <defaults>
</compile_context>

<pallas_src>
import jax
import jax.numpy as jnp
from jax import lax
from jax.experimental import pallas as pl
from jax.experimental.pallas import tpu as pltpu


# ------------------------------ helpers ------------------------------------

def _round_up(x: int, m: int) -> int:
    return ((x + m - 1) // m) * m


def _sublane(dtype) -> int:
    # Minimum sublane multiple for the second-to-last dim: 8 f32, 16 bf16, 32 int8/fp8.
    return max(8, 32 // jnp.dtype(dtype).itemsize)


_VMEM_BUDGET = 24 * 1024 * 1024       # target double-buffered working set
_VMEM_LIMIT = 32 * 1024 * 1024        # scoped VMEM limit (safe on v5e/v6e/v7x)
_RESIDENT_W_BYTES = 4 * 1024 * 1024   # weight size for the resident-weight path
_SMALL_FLOPS = 1 << 22                # below this, plain XLA dot is faster


def _nt_dot(a, b):
    # y[m, n] = sum_k a[m, k] * b[n, k]  (transposed RHS folded into the MXU).
    return lax.dot_general(
        a, b,
        dimension_numbers=(((1,), (1,)), ((), ())),
        preferred_element_type=jnp.float32,
    )


# ------------------------------ kernels ------------------------------------

def _tiled_kernel(x_ref, w_ref, o_ref, acc_ref):
    # Grid = (M_blocks, N_blocks, K_blocks); K is the innermost reduction axis.
    @pl.when(pl.program_id(2) == 0)
    def _init():
        acc_ref[...] = jnp.zeros_like(acc_ref)

    acc_ref[...] += _nt_dot(x_ref[...], w_ref[...])

    @pl.when(pl.program_id(2) == pl.num_programs(2) - 1)
    def _writeback():
        o_ref[...] = acc_ref[...].astype(o_ref.dtype)


def _resident_kernel(x_ref, w_ref, o_ref):
    # Whole (N, K) weight is resident in VMEM; full-K contraction per M tile.
    o_ref[...] = _nt_dot(x_ref[...], w_ref[...]).astype(o_ref.dtype)


# ------------------------------ wrappers ------------------------------------

def _tiled_matmul_nt(x, w):
    M, K = x.shape
    N, _ = w.shape
    dtype = x.dtype
    item = jnp.dtype(dtype).itemsize
    sub = _sublane(dtype)

    # Big M/N tiles for arithmetic intensity (tm*tn/(tm+tn) flop/byte).
    TM = 1024 if item <= 2 else 512
    TN, TK = 1024, 512

    tm = min(TM, _round_up(M, sub))
    tn = min(TN, _round_up(N, 128))
    tk = min(TK, _round_up(K, 128))

    # Keep both TensorCores busy on megacore parts (v7x).
    if pl.cdiv(M, tm) * pl.cdiv(N, tn) < 2 and N > 128:
        tn = _round_up(pl.cdiv(N, 2), 128)

    # Shrink until the double-buffered working set fits the VMEM budget.
    def vmem(tm_, tn_, tk_):
        return 2 * (tm_ * tk_ + tn_ * tk_ + tm_ * tn_) * item + tm_ * tn_ * 4

    while vmem(tm, tn, tk) > _VMEM_BUDGET:
        if tk > 256:
            tk //= 2
        elif tn > 256:
            tn //= 2
        elif tm > 2 * sub:
            tm = max(sub, _round_up(tm // 2, sub))
        else:
            break

    # Only K needs zero padding (it feeds the accumulation); M/N edge blocks
    # are handled by masked partial-block loads/stores.
    Kp = _round_up(K, tk)
    xp = x if Kp == K else jnp.pad(x, ((0, 0), (0, Kp - K)))
    wp = w if Kp == K else jnp.pad(w, ((0, 0), (0, Kp - K)))

    gm, gn, gk = pl.cdiv(M, tm), pl.cdiv(N, tn), Kp // tk

    return pl.pallas_call(
        _tiled_kernel,
        out_shape=jax.ShapeDtypeStruct((M, N), dtype),
        grid_spec=pltpu.PrefetchScalarGridSpec(
            num_scalar_prefetch=0,
            grid=(gm, gn, gk),
            in_specs=[
                pl.BlockSpec((tm, tk), lambda i, j, k: (i, k)),   # x tile
                pl.BlockSpec((tn, tk), lambda i, j, k: (j, k)),   # weight tile (NT)
            ],
            out_specs=pl.BlockSpec((tm, tn), lambda i, j, k: (i, j)),
            scratch_shapes=[pltpu.VMEM((tm, tn), jnp.float32)],
        ),
        compiler_params=pltpu.CompilerParams(
            dimension_semantics=("parallel", "parallel", "arbitrary"),
            vmem_limit_bytes=_VMEM_LIMIT,
        ),
        cost_estimate=pl.CostEstimate(
            flops=2 * M * N * Kp,
            transcendentals=0,
            # Account for tiling re-reads: x re-read gn times, w re-read gm times.
            bytes_accessed=(M * Kp * gn + N * Kp * gm + M * N) * item,
        ),
    )(xp, wp)


def _resident_matmul_nt(x, w):
    M, K = x.shape
    N, _ = w.shape
    dtype = x.dtype
    item = jnp.dtype(dtype).itemsize
    sub = _sublane(dtype)

    TM = 1024 if item <= 2 else 512
    tm = min(TM, _round_up(M, sub))

    # Keep both TensorCores busy on megacore parts (v7x).
    if pl.cdiv(M, tm) < 2 and M > sub:
        tm = _round_up(pl.cdiv(M, 2), sub)

    def vmem(tm_):
        # double-buffered x / out blocks + (double-buffered) whole weight
        return 2 * (tm_ * K + tm_ * N) * item + 2 * N * K * item

    while vmem(tm) > _VMEM_BUDGET and tm > sub:
        tm = max(sub, _round_up(tm // 2, sub))

    gm = pl.cdiv(M, tm)

    return pl.pallas_call(
        _resident_kernel,
        out_shape=jax.ShapeDtypeStruct((M, N), dtype),
        grid_spec=pltpu.PrefetchScalarGridSpec(
            num_scalar_prefetch=0,
            grid=(gm,),
            in_specs=[
                pl.BlockSpec((tm, K), lambda i: (i, 0)),   # x tile, full K
                pl.BlockSpec((N, K), lambda i: (0, 0)),    # whole weight, DMA'd once
            ],
            out_specs=pl.BlockSpec((tm, N), lambda i: (i, 0)),
        ),
        compiler_params=pltpu.CompilerParams(
            dimension_semantics=("parallel",),
            vmem_limit_bytes=_VMEM_LIMIT,
        ),
        cost_estimate=pl.CostEstimate(
            flops=2 * M * N * K,
            transcendentals=0,
            bytes_accessed=(M * K + N * K + M * N) * item,
        ),
    )(x, w)


def one_param_forward(x: jax.Array, weight: jax.Array) -> jax.Array:
    """Forward pass of `one_param`: y = x @ weight.T (bias-free nn.Linear).

    x:      (..., input_size)
    weight: (output_size, input_size)
    Feed bf16 operands for peak MXU throughput; accumulation is always f32.
    """
    assert weight.ndim == 2
    lead_shape = None
    if x.ndim != 2:
        lead_shape = x.shape[:-1]
        x = x.reshape(-1, x.shape[-1])

    M, K = x.shape
    N, Kw = weight.shape
    assert K == Kw, f"input_size mismatch: {K} vs {Kw}"

    # Unify operand dtypes (mixed dtypes would silently promote inside the MXU).
    dtype = jnp.promote_types(x.dtype, weight.dtype)
    x = x.astype(dtype)
    weight = weight.astype(dtype)
    item = jnp.dtype(dtype).itemsize
    sub = _sublane(dtype)

    if 2 * M * N * K <= _SMALL_FLOPS:
        # Tiny matmul: pallas_call launch overhead dominates; use fused XLA dot.
        out = _nt_dot(x, weight).astype(dtype)
    elif (N * K * item <= _RESIDENT_W_BYTES
          and 2 * (sub * K + sub * N) * item + 2 * N * K * item <= _VMEM_BUDGET):
        out = _resident_matmul_nt(x, weight)
    else:
        out = _tiled_matmul_nt(x, weight)

    if lead_shape is not None:
        out = out.reshape(*lead_shape, N)
    return out


# ------------------------------ demo / checks -------------------------------

if __name__ == "__main__":
    key = jax.random.PRNGKey(0)
    k1, k2, k3, k4, k5, k6 = jax.random.split(key, 6)

    # --- Small shape consistent with the module: batch=8, in=32, out=16 -----
    batch, input_size, output_size = 8, 32, 16
    x = jax.random.normal(k1, (batch, input_size), jnp.float32)
    bound = 1.0 / (input_size ** 0.5)
    w = jax.random.uniform(k2, (output_size, input_size), jnp.float32,
                           minval=-bound, maxval=bound)
    y = one_param_forward(x, w)
    jax.block_until_ready(y)
    y_ref = jnp.dot(x, w.T, precision=lax.Precision.HIGHEST)
    assert y.shape == (batch, output_size)
    assert jnp.allclose(y, y_ref, atol=1e-4, rtol=1e-4), "small-shape mismatch"

    # --- Resident-weight Pallas path (bf16, weight fits in VMEM) ------------
    M2, K2, N2 = 256, 1024, 512
    x2 = jax.random.normal(k3, (M2, K2), jnp.bfloat16)
    w2 = (jax.random.normal(k4, (N2, K2), jnp.float32) * (1.0 / K2 ** 0.5)
          ).astype(jnp.bfloat16)
    y2 = one_param_forward(x2, w2)
    jax.block_until_ready(y2)
    ref2 = jnp.dot(x2.astype(jnp.float32), w2.astype(jnp.float32).T,
                   precision=lax.Precision.HIGHEST)
    assert y2.shape == (M2, N2)
    assert jnp.allclose(y2.astype(jnp.float32), ref2, atol=2e-2, rtol=2e-2), \
        "resident-path mismatch"

    # --- General tiled Pallas path (bf16, multi-tile grid + K reduction) ----
    M3, K3, N3 = 512, 2048, 2048
    x3 = jax.random.normal(k5, (M3, K3), jnp.bfloat16)
    w3 = (jax.random.normal(k6, (N3, K3), jnp.float32) * (1.0 / K3 ** 0.5)
          ).astype(jnp.bfloat16)
    y3 = one_param_forward(x3, w3)
    jax.block_until_ready(y3)
    ref3 = jnp.dot(x3.astype(jnp.float32), w3.astype(jnp.float32).T,
                   precision=lax.Precision.HIGHEST)
    assert y3.shape == (M3, N3)
    assert jnp.allclose(y3.astype(jnp.float32), ref3, atol=2e-2, rtol=2e-2), \
        "tiled-path mismatch"

    print("KERNEL_OK")
</pallas_src>

<mosaic_0001>
module attributes {stable_mosaic.version = 11 : i64} {
  func.func @_resident_kernel(%arg0: i32, %arg1: memref<128x1024xbf16, #tpu.memory_space<vmem>>, %arg2: memref<512x1024xbf16, #tpu.memory_space<vmem>>, %arg3: memref<128x512xbf16, #tpu.memory_space<vmem>>) attributes {dimension_semantics = [#tpu.dimension_semantics<parallel>], iteration_bounds = array<i64: 2>, scalar_prefetch = 0 : i64, scratch_operands = 0 : i64, tpu.core_type = #tpu.core_type<tc>, window_params = [{transform_indices = @transform_0, window_bounds = array<i64: 128, 1024>}, {pipeline_mode = #tpu.pipeline_mode<synchronous>, transform_indices = @transform_1, window_bounds = array<i64: 512, 1024>}, {transform_indices = @transform_2, window_bounds = array<i64: 128, 512>}]} {
    %c0 = arith.constant 0 : index
    %c0_0 = arith.constant 0 : index
    %0 = vector.load %arg1[%c0, %c0_0] : memref<128x1024xbf16, #tpu.memory_space<vmem>>, vector<128x1024xbf16>
    %c0_1 = arith.constant 0 : index
    %c0_2 = arith.constant 0 : index
    %1 = vector.load %arg2[%c0_1, %c0_2] : memref<512x1024xbf16, #tpu.memory_space<vmem>>, vector<512x1024xbf16>
    %cst = arith.constant dense<0.000000e+00> : vector<128x512xf32>
    %2 = tpu.matmul %0, %1, %cst {dimension_numbers = #tpu.dot_dimension_numbers<[1], [1], [0], [0], [0, 0, 1, 0], [], []>} : vector<128x1024xbf16>, vector<512x1024xbf16>, vector<128x512xf32> -> vector<128x512xf32>
    %3 = arith.truncf %2 : vector<128x512xf32> to vector<128x512xbf16>
    %c0_3 = arith.constant 0 : index
    %c0_4 = arith.constant 0 : index
    %4 = vector.load %arg3[%c0_3, %c0_4] : memref<128x512xbf16, #tpu.memory_space<vmem>>, vector<128x512xbf16>
    tpu.vector_store %arg3[%c0_3, %c0_4], %3 {strides = array<i32>} : memref<128x512xbf16, #tpu.memory_space<vmem>>, vector<128x512xbf16>,
    return
  }
  func.func @transform_0(%arg0: i32) -> (i32, i32) {
    %c0_i32 = arith.constant 0 : i32
    %c0_i32_0 = arith.constant 0 : i32
    return %arg0, %c0_i32 : i32, i32
  }
  func.func @transform_1(%arg0: i32) -> (i32, i32) {
    %c0_i32 = arith.constant 0 : i32
    %c0_i32_0 = arith.constant 0 : i32
    %c0_i32_1 = arith.constant 0 : i32
    return %c0_i32, %c0_i32_0 : i32, i32
  }
  func.func @transform_2(%arg0: i32) -> (i32, i32) {
    %c0_i32 = arith.constant 0 : i32
    %c0_i32_0 = arith.constant 0 : i32
    return %arg0, %c0_i32 : i32, i32
  }
}

</mosaic_0001>

<bundles_post_ra>
// kernel: tpu_custom_call.1
= control target key start
LH: loop header
LB: loop body
LE: loop exit
PB: predicated region body
PF: predicated region fallthrough
CT: control target
= control target key end

     0   :  { %7 = vsyncpa [#allocation3], 0  ;;  %s4486_s0 = inlined_call_operand.hbm [shape: bf16[256,1024], index: 0, kind: input, shape index: {}]   ;;  %s4487_s1 = inlined_call_operand.hbm [shape: bf16[512,1024], index: 1, kind: input, shape index: {}]   ;;  %s4488_s2 = inlined_call_operand.hbm [shape: bf16[256,512], index: 2, kind: output, shape index: {}]  }
   0x1   :  { %9 = vsyncpa [#allocation3 + $0x1], 0 }
   0x2   :  { %10 = vsyncpa [#allocation6], 0 }
   0x3   :  { %11 = vsyncpa [#allocation4], 0 }
   0x4   :  { %13 = vsyncpa [#allocation4 + $0x1], 0  ;;  %s4137_s9 = smov 0   ;;  %s4139_s10 = smov 0  }
   0x5   :  { %s4141_s11 = smov 0   ;;  %s4143_s12 = smov 0  }
   0x6 LB: > { %s4158_s13 = sadd.s32 4294967295, %s4113_s12   ;;  %s3326_s14 = sadd.s32 4294967294, %s4113_s12   ;;  %s4113_s12 = sphi %s4143_s12, %s4508_s12   ;;  %s4109_s11 = sphi %s4141_s11, %s4507_s11   ;;  %s4105_s10 = sphi %s4139_s10, %s4506_s10   ;;  %s4101_s9 = sphi %s4137_s9, %s4505_s9  }
   0x7   : > { %p39_p0 = scmp.ne.s32.totalorder %s4105_s10, %s4101_s9  ;;  %p4489_p1 = scmp.eq.s32.totalorder %s4158_s13, 0 }
   0x8   : > { %p90_p3 = scmp.eq.s32.totalorder %s3326_s14, 1  ;;  %p3327_p5 = scmp.ge.s32.totalorder %s4113_s12, 1 }
   0x9   : > { %p4167_p4 = por %p4489_p1, %p39_p0  ;;  %p97_p7 = scmp.lt.s32.totalorder %s4113_s12, 3 }
   0xa   : > { %p4172_p6 = por %p90_p3, %p39_p0  ;;  %s4115_s18 = smov [#allocation5]  }
   0xb   : > { %s4492_s15 = scalar_select %p4167_p4, 1, 0 }
   0xc   : > { %s4493_s16 = scalar_select %p4172_p6, 1, 0 }
   0xd   : > { %p4177_p8 = pnand %p3327_p5, %p97_p7  ;;  %s109_s19 = sshll.u32 %s4115_s18, 4  ;;  %s4181_s19 = int_to_ptr.vmem [resolvable:$true] %s109_s19 }
   0xe   : > { %s4193_s21 = sadd.s32 1, %s4113_s12   ;;  %s26_s22 = sadd.s32 1, %s4109_s11 }
   0xf   : > { %s4494_s17 = scalar_select %p4177_p8, 1, 0 }
  0x10   : > { %p3932_p9 = pneg %p4177_p8  ;;  %s23_s23 = ssub.s32 %s4113_s12, %s4193_s21 }
  0x11   : > { %s3985_s26 = scalar_lea.hbm %s4487_s1, 32768 }
  0x12   : > { %p4188_p11 = pnand %p3932_p9, %p4489_p1  ;;  %p3986_p12 = scmp.ne.s32.totalorder %s4487_s1, %s3985_s26 }
  0x13   : > { %p3992_p5 = scmp.lt.u32.totalorder %s3985_s26, %s4487_s1 }
  0x14   : > { %p3987_p13 = pneg %p4188_p11 }
  0x16   : > { %p3988_p0 = pnand %p3987_p13, %p3986_p12 }
  0x18   : > { %p3989_p3 = pneg %p3988_p0 }
  0x1a   : > { %p3994_p7 = pnand %p3992_p5, %p3989_p3 }
  0x1c   : > { %3997 = shalt.err (!%p3994_p7)
}
  0x1d   : > { %s3998_s3 = scalar_lea.vmem %s4181_s19, 32768  ;;  %p4006_p2 = scmp.lt.s32.totalorder %s4181_s19, %s4181_s19 }
  0x1e   : > { %p3999_p9 = scmp.ne.s32.totalorder %s4181_s19, %s3998_s3  ;;  %p4007_p6 = scmp.lt.s32.totalorder %s3998_s3, %s3998_s3 }
  0x20   : > { %p4001_p10 = pnand %p3999_p9, %p3987_p13  ;;  %p4008_p4 = por %p4007_p6, %p4006_p2 }
  0x22   : > { %p4002_p1 = pneg %p4001_p10 }
  0x24   : > { %p4009_p8 = pnand %p4008_p4, %p4002_p1 }
  0x26   : > { %4012 = shalt.err (!%p4009_p8)
}
  0x27   : > { %s4116_s4 = smov 512   ;;  %s4117_s5 = smov 32  }
  0x28   : > { %3935 = dma.hbm_to_vmem [thread:$0]  (!%p4188_p11), %s4487_s1, 32768, %s4181_s19, [#allocation6], %s4116_s4, %s4116_s4, %s4117_s5  }
  0x29   : > { %p24_p1 = scmp.eq.s32.totalorder %s23_s23, 0  ;;  %p33_p2 = scmp.ne.s32.totalorder %s4109_s11, %s4105_s10 }
  0x2a   : > { %p34_p4 = scmp.eq.s32.totalorder %s4113_s12, 0  ;;  %p3945_p6 = scmp.lt.s32.totalorder %s4113_s12, 2 }
  0x2b   : > { %s4227_s8 = scalar_select %p24_p1, %s4109_s11, %s26_s22  }
  0x2c   : > { %p35_p8 = por %p34_p4, %p33_p2  ;;  %p4496_p10 = scmp.eq.s32.totalorder %s4158_s13, 1 }
  0x2d   : > { %s123_s18 = sand.u32 1, %s4109_s11   ;;  %s3697_s20 = sshll.u32 %s4113_s12, 13 }
  0x2e   : > { %p4231_p12 = por %p4496_p10, %p33_p2  ;;  %s3330_s24 = sshll.u32 %s123_s18, 9 }
  0x2f   : > { %s4240_s27 = scalar_lea.hbm %s4486_s0, %s3697_s20  ;;  %s127_s19 = scalar_lea.vmem [#allocation2], %s3330_s24 }
  0x30   : > { %s135_s22 = sshll.u32 %s127_s19, 4  ;;  %p4242_p11 = pnand %p3945_p6, %p35_p8  ;;  %s4246_s22 = int_to_ptr.vmem [resolvable:$true] %s135_s22 }
  0x31   : > { %s4248_s28 = scalar_lea.sflag [#allocation3], %s123_s18  ;;  %s4013_s29 = scalar_lea.hbm %s4240_s27, 8192 }
  0x32   : > { %p4014_p13 = scmp.ne.s32.totalorder %s4240_s27, %s4013_s29  ;;  %p4015_p0 = pneg %p4242_p11 }
  0x33   : > { %s4018_s6 = scalar_lea.hbm %s4486_s0, 16384  ;;  %p4019_p7 = scmp.lt.u32.totalorder %s4240_s27, %s4486_s0 }
  0x34   : > { %p4016_p3 = pnand %p4015_p0, %p4014_p13  ;;  %p4020_p9 = scmp.lt.u32.totalorder %s4018_s6, %s4013_s29 }
  0x35   : > { %p4022_p2 = scmp.lt.u32.totalorder %s4013_s29, %s4240_s27 }
  0x36   : > { %p4017_p5 = pneg %p4016_p3  ;;  %p4021_p1 = por %p4020_p9, %p4019_p7 }
  0x38   : > { %p4023_p4 = por %p4022_p2, %p4021_p1 }
  0x3a   : > { %p4024_p6 = pnand %p4023_p4, %p4017_p5 }
  0x3c   : > { %4027 = shalt.err (!%p4024_p6)
}
  0x3d   : > { %s4028_s18 = scalar_lea.vmem %s4246_s22, 8192  ;;  %s4118_s24 = smov [#allocation2]  }
  0x3e   : > { %p4029_p8 = scmp.ne.s32.totalorder %s4246_s22, %s4028_s18  ;;  %s4033_s25 = sshll.u32 %s4118_s24, 4  ;;  %s4034_s25 = int_to_ptr.vmem [resolvable:$false] %s4033_s25 }
  0x3f   : > { %s4035_s26 = scalar_lea.vmem %s4034_s25, 16384  ;;  %p4036_p3 = scmp.lt.s32.totalorder %s4246_s22, %s4034_s25 }
  0x40   : > { %p4031_p10 = pnand %p4029_p8, %p4015_p0  ;;  %p4037_p7 = scmp.lt.s32.totalorder %s4035_s26, %s4028_s18 }
  0x42   : > { %p4032_p13 = pneg %p4031_p10  ;;  %p4038_p9 = por %p4037_p7, %p4036_p3 }
  0x44   : > { %p4039_p1 = pnand %p4038_p9, %p4032_p13 }
  0x46   : > { %4042 = shalt.err (!%p4039_p1)
}
  0x47   : > { %3939 = dma.hbm_to_vmem [thread:$0]  (!%p4242_p11), %s4240_s27, 8192, %s4246_s22, %s4248_s28, %s4116_s4, %s4116_s4, %s4117_s5  }
  0x48   : > { %p4499_p0 = scmp.ne.s32.totalorder %s4494_s17, 0 }
  0x49   : > { %s4282_s19 = sand.u32 (!%p4499_p0), 1, %s4105_s10   ;;  %p4500_p5 = scmp.ne.s32.totalorder (!%p4499_p0), %s4492_s15, 0 }
  0x4a   : > { %147 = sbr.rel (%p4499_p0) target bundleno = 891 (0x37b), region = 28  ;;  %s3335_s29 = sshll.u32 (!%p4499_p0), %s4282_s19, 9 }
  0x4b   : > { %s150_s30 = scalar_lea.sflag (!%p4499_p0), [#allocation3], %s4282_s19  ;;  %s4286_s3 = scalar_lea.vmem (!%p4499_p0), [#allocation2], %s3335_s29 }
  0x51   : > { %4088 = dma.done.wait (%p4500_p5), %s150_s30, 8192  }
  0x52   : > { %4090 = vsyncadd (%p4500_p5), %s150_s30, 4294959104  ;;  %p4501_p11 = scmp.eq.s32.totalorder %s4158_s13, 0 }
  0x54   : > { %4092 = dma.done.wait (%p4501_p11), [#allocation6], 32768   ;;  %p4502_p2 = pmov %p4501_p11 }
  0x55   : > { %v244_v0 = vld [vmem:[#allocation5] sm:$0xff]  ;;  %s3337_s15 = sshll.u32 %s4282_s19, 8  ;;  %s3731_s4 = sshll.u32 %s4158_s13, 12 }
  0x56   : > { %4094 = vsyncadd (%p4502_p2), [#allocation6], 4294934528  ;;  %v248_v1 = vld [vmem:[#allocation5 + $0x20] sm:$0xff]  ;;  %s4401_s17 = scalar_lea.vmem [#allocation7], %s3337_s15  ;;  %s4437_s23 = scalar_lea.hbm %s4488_s2, %s3731_s4 }
  0x57   : > { %v372_v2 = vld [vmem:[#allocation5 + $0x400] sm:$0xff]  ;;  %v3403_v3 = vcombine.high %v244_v0, %v248_v1  ;;  %v3402_v5 = vcombine.low %v244_v0, %v248_v1  ;;  %s3243_s5 = sshll.u32 %s4401_s17, 4  ;;  %s3229_s13 = scalar_lea.sflag [#allocation4], %s4282_s19  ;;  %s4439_s5 = int_to_ptr.vmem [resolvable:$true] %s3243_s5 }
  0x58   : > { %v376_v4 = vld [vmem:[#allocation5 + $0x420] sm:$0xff]  ;;  %s4043_s28 = scalar_lea.vmem %s4439_s5, 4096  ;;  %s4119_s6 = smov [#allocation7]  }
  0x59   : > { %v252_v6 = vld [vmem:[#allocation5 + $0x40] sm:$0xff]  ;;  %v3531_v8 = vcombine.high %v372_v2, %v376_v4  ;;  %v3530_v9 = vcombine.low %v372_v2, %v376_v4  ;;  %2100 = vmatprep.subr.bf16.mxu0 %v3403_v3  ;;  %p4044_p4 = scmp.ne.s32.totalorder %s4439_s5, %s4043_s28  ;;  %s4047_s7 = sshll.u32 %s4119_s6, 4  ;;  %s4048_s7 = int_to_ptr.vmem [resolvable:$false] %s4047_s7 }
  0x5a   : > { %v256_v7 = vld [vmem:[#allocation5 + $0x60] sm:$0xff]  ;;  %2101 = vmatpush1.bf16.xpose.msra.mxu0 %v3402_v5  ;;  %s4049_s20 = scalar_lea.vmem %s4048_s7, 8192  ;;  %p4050_p10 = scmp.lt.s32.totalorder %s4439_s5, %s4048_s7 }
  0x5b   : > { %v3411_v10 = vcombine.high %v252_v6, %v256_v7  ;;  %v380_v11 = vld [vmem:[#allocation5 + $0x440] sm:$0xff]  ;;  %2552 = vmatprep.subr.bf16.mxu1 %v3531_v8  ;;  %v3410_v18 = vcombine.low %v252_v6, %v256_v7  ;;  %p4045_p6 = pnand %p4044_p4, %p4231_p12  ;;  %p4051_p13 = scmp.lt.s32.totalorder %s4049_s20, %s4043_s28 }
  0x5c   : > { %v384_v12 = vld [vmem:[#allocation5 + $0x460] sm:$0xff]  ;;  %2553 = vmatpush1.bf16.xpose.msra.mxu1 %v3530_v9 }
  0x5d   : > { %v3539_v13 = vcombine.high %v380_v11, %v384_v12  ;;  %2102 = vmatprep.subr.bf16.mxu0 %v3411_v10  ;;  %v260_v14 = vld [vmem:[#allocation5 + $0x80] sm:$0xff]  ;;  %v3538_v19 = vcombine.low %v380_v11, %v384_v12  ;;  %p4046_p8 = pneg %p4045_p6  ;;  %p4052_p3 = por %p4051_p13, %p4050_p10 }
  0x5e   : > { %v264_v15 = vld [vmem:[#allocation5 + $0xa0] sm:$0xff] }
  0x5f   : > { %2554 = vmatprep.subr.bf16.mxu1 %v3539_v13  ;;  %v388_v16 = vld [vmem:[#allocation5 + $0x480] sm:$0xff]  ;;  %v3419_v20 = vcombine.high %v260_v14, %v264_v15  ;;  %v3418_v26 = vcombine.low %v260_v14, %v264_v15  ;;  %p4053_p7 = pnand %p4052_p3, %p4046_p8 }
  0x60   : > { %v392_v17 = vld [vmem:[#allocation5 + $0x4a0] sm:$0xff] }
  0x61   : > { %v3547_v21 = vcombine.high %v388_v16, %v392_v17  ;;  %v268_v22 = vld [vmem:[#allocation5 + $0xc0] sm:$0xff]  ;;  %v3546_v27 = vcombine.low %v388_v16, %v392_v17 }
  0x62   : > { %2103 = vmatpush1.bf16.xpose.msra.mxu0 %v3410_v18  ;;  %v272_v23 = vld [vmem:[#allocation5 + $0xe0] sm:$0xff] }
  0x63   : > { %2104 = vmatprep.subr.bf16.mxu0 %v3419_v20  ;;  %v396_v24 = vld [vmem:[#allocation5 + $0x4c0] sm:$0xff]  ;;  %v3427_v28 = vcombine.high %v268_v22, %v272_v23  ;;  %v3426_v38 = vcombine.low %v268_v22, %v272_v23 }
  0x64   : > { %2555 = vmatpush1.bf16.xpose.msra.mxu1 %v3538_v19  ;;  %v400_v25 = vld [vmem:[#allocation5 + $0x4e0] sm:$0xff] }
  0x65   : > { %2556 = vmatprep.subr.bf16.mxu1 %v3547_v21  ;;  %v3555_v29 = vcombine.high %v396_v24, %v400_v25  ;;  %v180_v30 = vld [vmem:[%s4286_s3] sm:$0xff]  ;;  %v3554_v39 = vcombine.low %v396_v24, %v400_v25 }
  0x66   : > { %v184_v31 = vld [vmem:[%s4286_s3 + $0x20] sm:$0xff] }
  0x67   : > { %v276_v32 = vld [vmem:[#allocation5 + $0x100] sm:$0xff]  ;;  %v4298_v34 = vcombine.low %v180_v30, %v184_v31  ;;  %v3339_v35 = vcombine.high %v180_v30, %v184_v31 }
  0x68   : > { %v280_v33 = vld [vmem:[#allocation5 + $0x120] sm:$0xff] }
  0x69   : > { %v404_v36 = vld [vmem:[#allocation5 + $0x500] sm:$0xff]  ;;  %2132 = vmatprep.mubr.bf16.mxu0 %v3339_v35  ;;  %2584 = vmatprep.mubr.bf16.mxu1 %v3339_v35  ;;  %v3435_v40 = vcombine.high %v276_v32, %v280_v33  ;;  %v3434_v46 = vcombine.low %v276_v32, %v280_v33 }
  0x6a   : > { %2105 = vmatpush1.bf16.xpose.msra.mxu0 %v3418_v26  ;;  %v408_v37 = vld [vmem:[#allocation5 + $0x520] sm:$0xff] }
  0x6b   : > { %2106 = vmatprep.subr.bf16.mxu0 %v3427_v28  ;;  %v3563_v41 = vcombine.high %v404_v36, %v408_v37  ;;  %v284_v42 = vld [vmem:[#allocation5 + $0x140] sm:$0xff]  ;;  %v3562_v47 = vcombine.low %v404_v36, %v408_v37 }
  0x6c   : > { %2557 = vmatpush1.bf16.xpose.msra.mxu1 %v3546_v27  ;;  %v288_v43 = vld [vmem:[#allocation5 + $0x160] sm:$0xff] }
  0x6d   : > { %2558 = vmatprep.subr.bf16.mxu1 %v3555_v29  ;;  %v412_v44 = vld [vmem:[#allocation5 + $0x540] sm:$0xff]  ;;  %v3443_v48 = vcombine.high %v284_v42, %v288_v43  ;;  %v3442_v54 = vcombine.low %v284_v42, %v288_v43 }
  0x6e   : > { %v416_v45 = vld [vmem:[#allocation5 + $0x560] sm:$0xff] }
  0x6f   : > { %v3571_v49 = vcombine.high %v412_v44, %v416_v45  ;;  %v292_v50 = vld [vmem:[#allocation5 + $0x180] sm:$0xff]  ;;  %v3570_v55 = vcombine.low %v412_v44, %v416_v45 }
  0x70   : > { %v296_v51 = vld [vmem:[#allocation5 + $0x1a0] sm:$0xff] }
  0x71   : > { %v420_v52 = vld [vmem:[#allocation5 + $0x580] sm:$0xff]  ;;  %v3451_v56 = vcombine.high %v292_v50, %v296_v51  ;;  %v3450_v62 = vcombine.low %v292_v50, %v296_v51 }
  0x72   : > { %2107 = vmatpush1.bf16.xpose.msra.mxu0 %v3426_v38  ;;  %v424_v53 = vld [vmem:[#allocation5 + $0x5a0] sm:$0xff] }
  0x73   : > { %2108 = vmatprep.subr.bf16.mxu0 %v3435_v40  ;;  %v3579_v57 = vcombine.high %v420_v52, %v424_v53  ;;  %v300_v58 = vld [vmem:[#allocation5 + $0x1c0] sm:$0xff]  ;;  %v3578_v63 = vcombine.low %v420_v52, %v424_v53 }
  0x74   : > { %2559 = vmatpush1.bf16.xpose.msra.mxu1 %v3554_v39  ;;  %v304_v59 = vld [vmem:[#allocation5 + $0x1e0] sm:$0xff] }
  0x75   : > { %2560 = vmatprep.subr.bf16.mxu1 %v3563_v41  ;;  %v428_v60 = vld [vmem:[#allocation5 + $0x5c0] sm:$0xff]  ;;  %v3459_v0 = vcombine.high %v300_v58, %v304_v59  ;;  %v3458_v6 = vcombine.low %v300_v58, %v304_v59 }
  0x76   : > { %v432_v61 = vld [vmem:[#allocation5 + $0x5e0] sm:$0xff] }
  0x77   : > { %v3587_v1 = vcombine.high %v428_v60, %v432_v61  ;;  %v308_v2 = vld [vmem:[#allocation5 + $0x200] sm:$0xff]  ;;  %v3586_v7 = vcombine.low %v428_v60, %v432_v61 }
  0x78   : > { %v312_v3 = vld [vmem:[#allocation5 + $0x220] sm:$0xff] }
  0x79   : > { %v436_v4 = vld [vmem:[#allocation5 + $0x600] sm:$0xff]  ;;  %v3467_v8 = vcombine.high %v308_v2, %v312_v3  ;;  %v3466_v14 = vcombine.low %v308_v2, %v312_v3  ;;  %v245_v3 = vld [vmem:[#allocation5 + $0x8] sm:$0xff] }
  0x7a   : > { %2109 = vmatpush1.bf16.xpose.msra.mxu0 %v3434_v46  ;;  %v440_v5 = vld [vmem:[#allocation5 + $0x620] sm:$0xff] }
  0x7b   : > { %2110 = vmatprep.subr.bf16.mxu0 %v3443_v48  ;;  %v3595_v9 = vcombine.high %v436_v4, %v440_v5  ;;  %v316_v10 = vld [vmem:[#allocation5 + $0x240] sm:$0xff]  ;;  %v3594_v15 = vcombine.low %v436_v4, %v440_v5  ;;  %v249_v4 = vld [vmem:[#allocation5 + $0x28] sm:$0xff] }
  0x7c   : > { %2561 = vmatpush1.bf16.xpose.msra.mxu1 %v3562_v47  ;;  %v320_v11 = vld [vmem:[#allocation5 + $0x260] sm:$0xff]  ;;  %v373_v5 = vld [vmem:[#allocation5 + $0x408] sm:$0xff] }
  0x7d   : > { %2562 = vmatprep.subr.bf16.mxu1 %v3571_v49  ;;  %v444_v12 = vld [vmem:[#allocation5 + $0x640] sm:$0xff]  ;;  %v3475_v16 = vcombine.high %v316_v10, %v320_v11  ;;  %v3474_v22 = vcombine.low %v316_v10, %v320_v11  ;;  %v4301_v11 = vld [vmem:[%s4286_s3 + $0x8] sm:$0xff] }
  0x7e   : > { %v448_v13 = vld [vmem:[#allocation5 + $0x660] sm:$0xff] }
  0x7f   : > { %v3603_v17 = vcombine.high %v444_v12, %v448_v13  ;;  %v324_v18 = vld [vmem:[#allocation5 + $0x280] sm:$0xff]  ;;  %v3602_v23 = vcombine.low %v444_v12, %v448_v13  ;;  %v4304_v12 = vld [vmem:[%s4286_s3 + $0x28] sm:$0xff] }
  0x80   : > { %v328_v19 = vld [vmem:[#allocation5 + $0x2a0] sm:$0xff]  ;;  %v253_v13 = vld [vmem:[#allocation5 + $0x48] sm:$0xff] }
  0x81   : > { %v452_v20 = vld [vmem:[#allocation5 + $0x680] sm:$0xff]  ;;  %v3483_v24 = vcombine.high %v324_v18, %v328_v19  ;;  %v3482_v30 = vcombine.low %v324_v18, %v328_v19 }
  0x82   : > { %2111 = vmatpush1.bf16.xpose.msra.mxu0 %v3442_v54  ;;  %v456_v21 = vld [vmem:[#allocation5 + $0x6a0] sm:$0xff] }
  0x83   : > { %2112 = vmatprep.subr.bf16.mxu0 %v3451_v56  ;;  %v3611_v25 = vcombine.high %v452_v20, %v456_v21  ;;  %v332_v26 = vld [vmem:[#allocation5 + $0x2c0] sm:$0xff]  ;;  %v3610_v31 = vcombine.low %v452_v20, %v456_v21  ;;  %v3404_v20 = vcombine.low %v245_v3, %v249_v4 }
  0x84   : > { %2563 = vmatpush1.bf16.xpose.msra.mxu1 %v3570_v55  ;;  %v336_v27 = vld [vmem:[#allocation5 + $0x2e0] sm:$0xff] }
  0x85   : > { %2564 = vmatprep.subr.bf16.mxu1 %v3579_v57  ;;  %v460_v28 = vld [vmem:[#allocation5 + $0x6c0] sm:$0xff]  ;;  %v3491_v32 = vcombine.high %v332_v26, %v336_v27  ;;  %v3490_v39 = vcombine.low %v332_v26, %v336_v27  ;;  %v265_v26 = vld [vmem:[#allocation5 + $0xa8] sm:$0xff] }
  0x86   : > { %v464_v29 = vld [vmem:[#allocation5 + $0x6e0] sm:$0xff]  ;;  %v389_v27 = vld [vmem:[#allocation5 + $0x488] sm:$0xff] }
  0x87   : > { %v3619_v33 = vcombine.high %v460_v28, %v464_v29  ;;  %v340_v35 = vld [vmem:[#allocation5 + $0x300] sm:$0xff]  ;;  %v3618_v40 = vcombine.low %v460_v28, %v464_v29  ;;  %v393_v28 = vld [vmem:[#allocation5 + $0x4a8] sm:$0xff] }
  0x88   : > { %v344_v36 = vld [vmem:[#allocation5 + $0x320] sm:$0xff] }
  0x89   : > { %v468_v37 = vld [vmem:[#allocation5 + $0x700] sm:$0xff]  ;;  %v3499_v41 = vcombine.high %v340_v35, %v344_v36  ;;  %v3498_v47 = vcombine.low %v340_v35, %v344_v36  ;;  %v3549_v36 = vcombine.high %v389_v27, %v393_v28 }
  0x8a   : > { %2113 = vmatpush1.bf16.xpose.msra.mxu0 %v3450_v62  ;;  %v472_v38 = vld [vmem:[#allocation5 + $0x720] sm:$0xff] }
  0x8b   : > { %2114 = vmatprep.subr.bf16.mxu0 %v3459_v0  ;;  %v3627_v42 = vcombine.high %v468_v37, %v472_v38  ;;  %v348_v43 = vld [vmem:[#allocation5 + $0x340] sm:$0xff]  ;;  %v3626_v48 = vcombine.low %v468_v37, %v472_v38  ;;  %v273_v38 = vld [vmem:[#allocation5 + $0xe8] sm:$0xff] }
  0x8c   : > { %2565 = vmatpush1.bf16.xpose.msra.mxu1 %v3578_v63  ;;  %v352_v44 = vld [vmem:[#allocation5 + $0x360] sm:$0xff] }
  0x8d   : > { %2566 = vmatprep.subr.bf16.mxu1 %v3587_v1  ;;  %v476_v45 = vld [vmem:[#allocation5 + $0x740] sm:$0xff]  ;;  %v3507_v49 = vcombine.high %v348_v43, %v352_v44  ;;  %v3506_v55 = vcombine.low %v348_v43, %v352_v44 }
  0x8e   : > { %v480_v46 = vld [vmem:[#allocation5 + $0x760] sm:$0xff] }
  0x8f   : > { %v3635_v50 = vcombine.high %v476_v45, %v480_v46  ;;  %v356_v51 = vld [vmem:[#allocation5 + $0x380] sm:$0xff]  ;;  %v3634_v56 = vcombine.low %v476_v45, %v480_v46  ;;  %v3548_v45 = vcombine.low %v389_v27, %v393_v28  ;;  %v433_v27 = vld [vmem:[#allocation5 + $0x5e8] sm:$0xff] }
  0x90   : > { %v360_v52 = vld [vmem:[#allocation5 + $0x3a0] sm:$0xff] }
  0x91   : > { %v484_v53 = vld [vmem:[#allocation5 + $0x780] sm:$0xff]  ;;  %v3515_v57 = vcombine.high %v356_v51, %v360_v52  ;;  %v3514_v63 = vcombine.low %v356_v51, %v360_v52  ;;  %v405_v51 = vld [vmem:[#allocation5 + $0x508] sm:$0xff] }
  0x92   : > { %2115 = vmatpush1.bf16.xpose.msra.mxu0 %v3458_v6  ;;  %v488_v54 = vld [vmem:[#allocation5 + $0x7a0] sm:$0xff]  ;;  %v377_v6 = vld [vmem:[#allocation5 + $0x428] sm:$0xff] }
  0x93   : > { %2116 = vmatprep.subr.bf16.mxu0 %v3467_v8  ;;  %v3643_v58 = vcombine.high %v484_v53, %v488_v54  ;;  %v364_v59 = vld [vmem:[#allocation5 + $0x3c0] sm:$0xff]  ;;  %v3642_v0 = vcombine.low %v484_v53, %v488_v54  ;;  %v3533_v10 = vcombine.high %v373_v5, %v377_v6  ;;  %v3532_v21 = vcombine.low %v373_v5, %v377_v6  ;;  %v409_v52 = vld [vmem:[#allocation5 + $0x528] sm:$0xff] }
  0x94   : > { %2567 = vmatpush1.bf16.xpose.msra.mxu1 %v3586_v7  ;;  %v368_v60 = vld [vmem:[#allocation5 + $0x3e0] sm:$0xff]  ;;  %v3564_v5 = vcombine.low %v405_v51, %v409_v52 }
  0x95   : > { %2568 = vmatprep.subr.bf16.mxu1 %v3595_v9  ;;  %v492_v61 = vld [vmem:[#allocation5 + $0x7c0] sm:$0xff]  ;;  %v3523_v1 = vcombine.high %v364_v59, %v368_v60  ;;  %v3522_v7 = vcombine.low %v364_v59, %v368_v60  ;;  %v3405_v9 = vcombine.high %v245_v3, %v249_v4  ;;  %v3565_v59 = vcombine.high %v405_v51, %v409_v52 }
  0x96   : > { %v496_v62 = vld [vmem:[#allocation5 + $0x7e0] sm:$0xff] }
  0x97   : > { %v3651_v2 = vcombine.high %v492_v61, %v496_v62  ;;  %v3650_v8 = vcombine.low %v492_v61, %v496_v62  ;;  %v188_v18 = vld [vmem:[%s4286_s3 + $0x40] sm:$0xff]  ;;  %v285_v61 = vld [vmem:[#allocation5 + $0x148] sm:$0xff] }
  0x98   : > { %v192_v19 = vld [vmem:[%s4286_s3 + $0x60] sm:$0xff]  ;;  %v289_v62 = vld [vmem:[#allocation5 + $0x168] sm:$0xff] }
  0x99   : > { %v3346_v29 = vcombine.low %v188_v18, %v192_v19  ;;  %v208_v43 = vld [vmem:[%s4286_s3 + $0xe0] sm:$0xff]  ;;  %v3445_v6 = vcombine.high %v285_v61, %v289_v62 }
  0x9a   : > { %2117 = vmatpush1.bf16.xpose.msra.mxu0 %v3466_v14  ;;  %v257_v14 = vld [vmem:[#allocation5 + $0x68] sm:$0xff]  ;;  %v212_v54 = vld [vmem:[%s4286_s3 + $0x100] sm:$0xff] }
  0x9b   : > { %2118 = vmatprep.subr.bf16.mxu0 %v3475_v16  ;;  %v4308_v16 = vcombine.low %v4301_v11, %v4304_v12  ;;  %v224_v3 = vld [vmem:[%s4286_s3 + $0x160] sm:$0xff] }
  0x9c   : > { %2569 = vmatpush1.bf16.xpose.msra.mxu1 %v3594_v15  ;;  %v381_v15 = vld [vmem:[#allocation5 + $0x448] sm:$0xff] }
  0x9d   : > { %2570 = vmatprep.subr.bf16.mxu1 %v3603_v17  ;;  %v385_v17 = vld [vmem:[#allocation5 + $0x468] sm:$0xff] }
  0xa2   : > { %2119 = vmatpush1.bf16.xpose.msra.mxu0 %v3474_v22  ;;  %v3413_v22 = vcombine.high %v253_v13, %v257_v14 }
  0xa3   : > { %2120 = vmatprep.subr.bf16.mxu0 %v3483_v24  ;;  %v3347_v24 = vcombine.high %v188_v18, %v192_v19  ;;  %v232_v18 = vld [vmem:[%s4286_s3 + $0x1a0] sm:$0xff]  ;;  %v3444_v19 = vcombine.low %v285_v61, %v289_v62  ;;  %v337_v61 = vld [vmem:[#allocation5 + $0x2e8] sm:$0xff] }
  0xa4   : > { %2571 = vmatpush1.bf16.xpose.msra.mxu1 %v3602_v23  ;;  %v3541_v23 = vcombine.high %v381_v15, %v385_v17  ;;  %v461_v62 = vld [vmem:[#allocation5 + $0x6c8] sm:$0xff] }
  0xa5   : > { %2572 = vmatprep.subr.bf16.mxu1 %v3611_v25  ;;  %v261_v25 = vld [vmem:[#allocation5 + $0x88] sm:$0xff] }
  0xa6   : > { %v3421_v35 = vcombine.high %v261_v25, %v265_v26  ;;  %v3420_v44 = vcombine.low %v261_v25, %v265_v26  ;;  %v305_v25 = vld [vmem:[#allocation5 + $0x1e8] sm:$0xff] }
  0xa7   : > { %v429_v26 = vld [vmem:[#allocation5 + $0x5c8] sm:$0xff] }
  0xaa   : > { %2121 = vmatpush1.bf16.xpose.msra.mxu0 %v3482_v30  ;;  %v196_v30 = vld [vmem:[%s4286_s3 + $0x80] sm:$0xff] }
  0xab   : > { %2122 = vmatprep.subr.bf16.mxu0 %v3491_v32  ;;  %v3412_v32 = vcombine.low %v253_v13, %v257_v14  ;;  %v421_v13 = vld [vmem:[#allocation5 + $0x588] sm:$0xff] }
  0xac   : > { %2573 = vmatpush1.bf16.xpose.msra.mxu1 %v3610_v31  ;;  %v200_v31 = vld [vmem:[%s4286_s3 + $0xa0] sm:$0xff]  ;;  %v425_v14 = vld [vmem:[#allocation5 + $0x5a8] sm:$0xff] }
  0xad   : > { %2574 = vmatprep.subr.bf16.mxu1 %v3619_v33  ;;  %v3540_v33 = vcombine.low %v381_v15, %v385_v17  ;;  %v3355_v37 = vcombine.high %v196_v30, %v200_v31  ;;  %v228_v17 = vld [vmem:[%s4286_s3 + $0x180] sm:$0xff] }
  0xae   : > { %v3386_v28 = vcombine.low %v228_v17, %v232_v18 }
  0xb2   : > { %2123 = vmatpush1.bf16.xpose.msra.mxu0 %v3490_v39  ;;  %v397_v39 = vld [vmem:[#allocation5 + $0x4c8] sm:$0xff] }
  0xb3   : > { %2124 = vmatprep.subr.bf16.mxu0 %v3499_v41  ;;  %v3354_v41 = vcombine.low %v196_v30, %v200_v31  ;;  %v240_v30 = vld [vmem:[%s4286_s3 + $0x1e0] sm:$0xff] }
  0xb4   : > { %2575 = vmatpush1.bf16.xpose.msra.mxu1 %v3618_v40  ;;  %v401_v40 = vld [vmem:[#allocation5 + $0x4e8] sm:$0xff] }
  0xb5   : > { %2576 = vmatprep.subr.bf16.mxu1 %v3627_v42  ;;  %v204_v42 = vld [vmem:[%s4286_s3 + $0xc0] sm:$0xff] }
  0xb6   : > { %v3362_v53 = vcombine.low %v204_v42, %v208_v43 }
  0xba   : > { %2125 = vmatpush1.bf16.xpose.msra.mxu0 %v3498_v47  ;;  %v3557_v47 = vcombine.high %v397_v39, %v401_v40 }
  0xbb   : > { %2126 = vmatprep.subr.bf16.mxu0 %v3507_v49  ;;  %v277_v49 = vld [vmem:[#allocation5 + $0x108] sm:$0xff] }
  0xbc   : > { %2577 = vmatpush1.bf16.xpose.msra.mxu1 %v3626_v48  ;;  %v3363_v48 = vcombine.high %v204_v42, %v208_v43  ;;  %v3588_v42 = vcombine.low %v429_v26, %v433_v27 }
  0xbd   : > { %2578 = vmatprep.subr.bf16.mxu1 %v3635_v50  ;;  %v281_v50 = vld [vmem:[#allocation5 + $0x128] sm:$0xff] }
  0xbe   : > { %v3436_v4 = vcombine.low %v277_v49, %v281_v50 }
  0xc2   : > { %2127 = vmatpush1.bf16.xpose.msra.mxu0 %v3506_v55  ;;  %v216_v55 = vld [vmem:[%s4286_s3 + $0x120] sm:$0xff] }
  0xc3   : > { %2128 = vmatprep.subr.bf16.mxu0 %v3515_v57  ;;  %v3556_v57 = vcombine.low %v397_v39, %v401_v40  ;;  %v3371_v60 = vcombine.high %v212_v54, %v216_v55  ;;  %v441_v39 = vld [vmem:[#allocation5 + $0x628] sm:$0xff] }
  0xc4   : > { %2579 = vmatpush1.bf16.xpose.msra.mxu1 %v3634_v56 }
  0xc5   : > { %2580 = vmatprep.subr.bf16.mxu1 %v3643_v58  ;;  %v3437_v58 = vcombine.high %v277_v49, %v281_v50  ;;  %v449_v49 = vld [vmem:[#allocation5 + $0x668] sm:$0xff] }
  0xca   : > { %2129 = vmatpush1.bf16.xpose.msra.mxu0 %v3514_v63  ;;  %v413_v63 = vld [vmem:[#allocation5 + $0x548] sm:$0xff] }
  0xcb   : > { %2130 = vmatprep.subr.bf16.mxu0 %v3523_v1  ;;  %v3370_v1 = vcombine.low %v212_v54, %v216_v55  ;;  %v453_v54 = vld [vmem:[#allocation5 + $0x688] sm:$0xff] }
  0xcc   : > { %2581 = vmatpush1.bf16.xpose.msra.mxu1 %v3642_v0  ;;  %v417_v0 = vld [vmem:[#allocation5 + $0x568] sm:$0xff] }
  0xcd   : > { %2582 = vmatprep.subr.bf16.mxu1 %v3651_v2  ;;  %v220_v2 = vld [vmem:[%s4286_s3 + $0x140] sm:$0xff]  ;;  %v457_v55 = vld [vmem:[#allocation5 + $0x6a8] sm:$0xff] }
  0xce   : > { %v3378_v15 = vcombine.low %v220_v2, %v224_v3 }
  0xd2   : > { %2131 = vmatpush1.bf16.xpose.msra.mxu0 %v3522_v7  ;;  %v3573_v7 = vcombine.high %v413_v63, %v417_v0 }
  0xd3   : > { %2213 = vmatprep.subr.bf16.mxu0 %v3405_v9  ;;  %v293_v9 = vld [vmem:[#allocation5 + $0x188] sm:$0xff] }
  0xd4   : > { %2583 = vmatpush1.bf16.xpose.msra.mxu1 %v3650_v8  ;;  %v3379_v8 = vcombine.high %v220_v2, %v224_v3 }
  0xd5   : > { %2665 = vmatprep.subr.bf16.mxu1 %v3533_v10  ;;  %v297_v10 = vld [vmem:[#allocation5 + $0x1a8] sm:$0xff] }
  0xd6   : > { %v3452_v31 = vcombine.low %v293_v9, %v297_v10 }
  0xd9   : > { %2133 = vmatmul.mubr.bf16.vlgmr.msra.gmra.mrb[0].mxu0 %v4298_v34 }
  0xda   : > { %2214 = vmatpush1.bf16.xpose.msra.mxu0 %v3404_v20  ;;  %2142 = vmatprep.mubr.bf16.mxu0 %v3347_v24  ;;  %v3572_v20 = vcombine.low %v413_v63, %v417_v0  ;;  %v465_v63 = vld [vmem:[#allocation5 + $0x6e8] sm:$0xff] }
  0xdb   : > { %2585 = vmatmul.mubr.bf16.vlgmr.msra.gmra.mrb[0].mxu1 %v4298_v34  ;;  %2215 = vmatprep.subr.bf16.mxu0 %v3413_v22  ;;  %v269_v34 = vld [vmem:[#allocation5 + $0xc8] sm:$0xff]  ;;  %v3581_v22 = vcombine.high %v421_v13, %v425_v14  ;;  %v3621_v3 = vcombine.high %v461_v62, %v465_v63 }
  0xdc   : > { %2666 = vmatpush1.bf16.xpose.msra.mxu1 %v3532_v21  ;;  %2594 = vmatprep.mubr.bf16.mxu1 %v3347_v24  ;;  %v3429_v46 = vcombine.high %v269_v34, %v273_v38  ;;  %v3428_v56 = vcombine.low %v269_v34, %v273_v38  ;;  %v3453_v21 = vcombine.high %v293_v9, %v297_v10  ;;  %v301_v24 = vld [vmem:[#allocation5 + $0x1c8] sm:$0xff] }
  0xdd   : > { %2667 = vmatprep.subr.bf16.mxu1 %v3541_v23  ;;  %v3387_v23 = vcombine.high %v228_v17, %v232_v18  ;;  %v313_v34 = vld [vmem:[#allocation5 + $0x228] sm:$0xff]  ;;  %v3620_v9 = vcombine.low %v461_v62, %v465_v63  ;;  %v394_v62 = vld [vmem:[#allocation5 + $0x4b0] sm:$0xff] }
  0xde   : > { %v437_v38 = vld [vmem:[#allocation5 + $0x608] sm:$0xff] }
  0xdf   : > { %v3596_v51 = vcombine.low %v437_v38, %v441_v39  ;;  %v477_v17 = vld [vmem:[#allocation5 + $0x748] sm:$0xff] }
  0xe0   : > { %v481_v18 = vld [vmem:[#allocation5 + $0x768] sm:$0xff] }
  0xe1   : > { %2143 = vmatmul.mubr.bf16.gmra.mrb[4].mxu0 %v3346_v29 }
  0xe2   : > { %2216 = vmatpush1.bf16.xpose.msra.mxu0 %v3412_v32  ;;  %2152 = vmatprep.mubr.bf16.mxu0 %v3355_v37  ;;  %v3580_v32 = vcombine.low %v421_v13, %v425_v14  ;;  %v349_v14 = vld [vmem:[#allocation5 + $0x348] sm:$0xff] }
  0xe3   : > { %2595 = vmatmul.mubr.bf16.gmra.mrb[4].mxu1 %v3346_v29  ;;  %2217 = vmatprep.subr.bf16.mxu0 %v3421_v35  ;;  %v236_v29 = vld [vmem:[%s4286_s3 + $0x1c0] sm:$0xff]  ;;  %v3589_v35 = vcombine.high %v429_v26, %v433_v27  ;;  %v489_v26 = vld [vmem:[#allocation5 + $0x7a8] sm:$0xff] }
  0xe4   : > { %2668 = vmatpush1.bf16.xpose.msra.mxu1 %v3540_v33  ;;  %2604 = vmatprep.mubr.bf16.mxu1 %v3355_v37  ;;  %v3461_v33 = vcombine.high %v301_v24, %v305_v25  ;;  %v309_v37 = vld [vmem:[#allocation5 + $0x208] sm:$0xff]  ;;  %v3394_v40 = vcombine.low %v236_v29, %v240_v30 }
  0xe5   : > { %2669 = vmatprep.subr.bf16.mxu1 %v3549_v36  ;;  %v3395_v36 = vcombine.high %v236_v29, %v240_v30  ;;  %v3469_v43 = vcombine.high %v309_v37, %v313_v34  ;;  %v3468_v50 = vcombine.low %v309_v37, %v313_v34 }
  0xe9   : > { %2153 = vmatmul.mubr.bf16.gmra.mrb[8].mxu0 %v3354_v41 }
  0xea   : > { %2218 = vmatpush1.bf16.xpose.msra.mxu0 %v3420_v44  ;;  %2162 = vmatprep.mubr.bf16.mxu0 %v3363_v48  ;;  %v3597_v44 = vcombine.high %v437_v38, %v441_v39  ;;  %v246_v39 = vld [vmem:[#allocation5 + $0x10] sm:$0xff] }
  0xeb   : > { %2605 = vmatmul.mubr.bf16.gmra.mrb[8].mxu1 %v3354_v41  ;;  %2219 = vmatprep.subr.bf16.mxu0 %v3429_v46  ;;  %v3460_v41 = vcombine.low %v301_v24, %v305_v25  ;;  %v317_v46 = vld [vmem:[#allocation5 + $0x248] sm:$0xff] }
  0xec   : > { %2670 = vmatpush1.bf16.xpose.msra.mxu1 %v3548_v45  ;;  %2614 = vmatprep.mubr.bf16.mxu1 %v3363_v48  ;;  %v3341_v45 = vcombine.high %v4301_v11, %v4304_v12  ;;  %v445_v48 = vld [vmem:[#allocation5 + $0x648] sm:$0xff] }
  0xed   : > { %2671 = vmatprep.subr.bf16.mxu1 %v3557_v47  ;;  %v321_v47 = vld [vmem:[#allocation5 + $0x268] sm:$0xff] }
  0xee   : > { %v3477_v52 = vcombine.high %v317_v46, %v321_v47  ;;  %v325_v11 = vld [vmem:[#allocation5 + $0x288] sm:$0xff] }
  0xef   : > { %v329_v12 = vld [vmem:[#allocation5 + $0x2a8] sm:$0xff] }
  0xf0   : > { %v3484_v0 = vcombine.low %v325_v11, %v329_v12  ;;  %v361_v24 = vld [vmem:[#allocation5 + $0x3a8] sm:$0xff] }
  0xf1   : > { %2163 = vmatmul.mubr.bf16.gmra.mrb[12].mxu0 %v3362_v53  ;;  %v485_v25 = vld [vmem:[#allocation5 + $0x788] sm:$0xff] }
  0xf2   : > { %2220 = vmatpush1.bf16.xpose.msra.mxu0 %v3428_v56  ;;  %2172 = vmatprep.mubr.bf16.mxu0 %v3371_v60  ;;  %v3476_v56 = vcombine.low %v317_v46, %v321_v47  ;;  %v3645_v30 = vcombine.high %v485_v25, %v489_v26  ;;  %v3644_v37 = vcombine.low %v485_v25, %v489_v26  ;;  %v4329_v47 = vld [vmem:[%s4286_s3 + $0x10] sm:$0xff]  ;;  %v213_v26 = vld [vmem:[%s4286_s3 + $0x108] sm:$0xff] }
  0xf3   : > { %2615 = vmatmul.mubr.bf16.gmra.mrb[12].mxu1 %v3362_v53  ;;  %2221 = vmatprep.subr.bf16.mxu0 %v3437_v58  ;;  %v3605_v53 = vcombine.high %v445_v48, %v449_v49  ;;  %v3485_v58 = vcombine.high %v325_v11, %v329_v12  ;;  %v189_v11 = vld [vmem:[%s4286_s3 + $0x48] sm:$0xff] }
  0xf4   : > { %2672 = vmatpush1.bf16.xpose.msra.mxu1 %v3556_v57  ;;  %2624 = vmatprep.mubr.bf16.mxu1 %v3371_v60  ;;  %v3604_v57 = vcombine.low %v445_v48, %v449_v49  ;;  %v333_v60 = vld [vmem:[#allocation5 + $0x2c8] sm:$0xff]  ;;  %v4332_v48 = vld [vmem:[%s4286_s3 + $0x30] sm:$0xff] }
  0xf5   : > { %2673 = vmatprep.subr.bf16.mxu1 %v3565_v59  ;;  %v3613_v59 = vcombine.high %v453_v54, %v457_v55  ;;  %v3493_v2 = vcombine.high %v333_v60, %v337_v61  ;;  %v254_v49 = vld [vmem:[#allocation5 + $0x50] sm:$0xff]  ;;  %v193_v12 = vld [vmem:[%s4286_s3 + $0x68] sm:$0xff] }
  0xf6   : > { %v3348_v63 = vcombine.low %v189_v11, %v193_v12 }
  0xf9   : > { %2173 = vmatmul.mubr.bf16.gmra.mrb[16].mxu0 %v3370_v1 }
  0xfa   : > { %2222 = vmatpush1.bf16.xpose.msra.mxu0 %v3436_v4  ;;  %2182 = vmatprep.mubr.bf16.mxu0 %v3379_v8  ;;  %v341_v4 = vld [vmem:[#allocation5 + $0x308] sm:$0xff] }
  0xfb   : > { %2625 = vmatmul.mubr.bf16.gmra.mrb[16].mxu1 %v3370_v1  ;;  %2223 = vmatprep.subr.bf16.mxu0 %v3445_v6  ;;  %v3612_v1 = vcombine.low %v453_v54, %v457_v55  ;;  %v469_v6 = vld [vmem:[#allocation5 + $0x708] sm:$0xff] }
  0xfc   : > { %2674 = vmatpush1.bf16.xpose.msra.mxu1 %v3564_v5  ;;  %2634 = vmatprep.mubr.bf16.mxu1 %v3379_v8  ;;  %v345_v5 = vld [vmem:[#allocation5 + $0x328] sm:$0xff]  ;;  %v3492_v8 = vcombine.low %v333_v60, %v337_v61  ;;  %v266_v60 = vld [vmem:[#allocation5 + $0xb0] sm:$0xff] }
  0xfd   : > { %2675 = vmatprep.subr.bf16.mxu1 %v3573_v7  ;;  %v473_v7 = vld [vmem:[#allocation5 + $0x728] sm:$0xff]  ;;  %v3501_v10 = vcombine.high %v341_v4, %v345_v5  ;;  %v390_v61 = vld [vmem:[#allocation5 + $0x490] sm:$0xff] }
  0xfe   : > { %v3629_v13 = vcombine.high %v469_v6, %v473_v7 }
 0x101   : > { %2183 = vmatmul.mubr.bf16.gmra.mrb[20].mxu0 %v3378_v15 }
 0x102   : > { %2224 = vmatpush1.bf16.xpose.msra.mxu0 %v3444_v19  ;;  %2192 = vmatprep.mubr.bf16.mxu0 %v3387_v23  ;;  %v3500_v19 = vcombine.low %v341_v4, %v345_v5  ;;  %v3551_v5 = vcombine.high %v390_v61, %v394_v62 }
 0x103   : > { %2635 = vmatmul.mubr.bf16.gmra.mrb[20].mxu1 %v3378_v15  ;;  %2225 = vmatprep.subr.bf16.mxu0 %v3453_v21  ;;  %v353_v15 = vld [vmem:[#allocation5 + $0x368] sm:$0xff] }
 0x104   : > { %2676 = vmatpush1.bf16.xpose.msra.mxu1 %v3572_v20  ;;  %2644 = vmatprep.mubr.bf16.mxu1 %v3387_v23  ;;  %v3628_v20 = vcombine.low %v469_v6, %v473_v7  ;;  %v3509_v21 = vcombine.high %v349_v14, %v353_v15  ;;  %v357_v23 = vld [vmem:[#allocation5 + $0x388] sm:$0xff]  ;;  %v3508_v27 = vcombine.low %v349_v14, %v353_v15  ;;  %v274_v7 = vld [vmem:[#allocation5 + $0xf0] sm:$0xff] }
 0x105   : > { %2677 = vmatprep.subr.bf16.mxu1 %v3581_v22  ;;  %v3637_v22 = vcombine.high %v477_v17, %v481_v18  ;;  %v3517_v29 = vcombine.high %v357_v23, %v361_v24  ;;  %v209_v14 = vld [vmem:[%s4286_s3 + $0xe8] sm:$0xff] }
 0x109   : > { %2193 = vmatmul.mubr.bf16.gmra.mrb[24].mxu0 %v3386_v28 }
 0x10a   : > { %2226 = vmatpush1.bf16.xpose.msra.mxu0 %v3452_v31  ;;  %2202 = vmatprep.mubr.bf16.mxu0 %v3395_v36  ;;  %v365_v31 = vld [vmem:[#allocation5 + $0x3c8] sm:$0xff] }
 0x10b   : > { %2645 = vmatmul.mubr.bf16.gmra.mrb[24].mxu1 %v3386_v28  ;;  %2227 = vmatprep.subr.bf16.mxu0 %v3461_v33  ;;  %v3636_v28 = vcombine.low %v477_v17, %v481_v18  ;;  %v493_v33 = vld [vmem:[#allocation5 + $0x7c8] sm:$0xff]  ;;  %v3550_v17 = vcombine.low %v390_v61, %v394_v62  ;;  %v434_v61 = vld [vmem:[#allocation5 + $0x5f0] sm:$0xff] }
 0x10c   : > { %2678 = vmatpush1.bf16.xpose.msra.mxu1 %v3580_v32  ;;  %2654 = vmatprep.mubr.bf16.mxu1 %v3395_v36  ;;  %v369_v32 = vld [vmem:[#allocation5 + $0x3e8] sm:$0xff]  ;;  %v3516_v36 = vcombine.low %v357_v23, %v361_v24  ;;  %v406_v23 = vld [vmem:[#allocation5 + $0x510] sm:$0xff] }
 0x10d   : > { %2679 = vmatprep.subr.bf16.mxu1 %v3589_v35  ;;  %v497_v35 = vld [vmem:[#allocation5 + $0x7e8] sm:$0xff]  ;;  %v3525_v34 = vcombine.high %v365_v31, %v369_v32  ;;  %v410_v24 = vld [vmem:[#allocation5 + $0x530] sm:$0xff] }
 0x10e   : > { %v3653_v38 = vcombine.high %v493_v33, %v497_v35 }
 0x111   : > { %2203 = vmatmul.mubr.bf16.gmra.mrb[28].mxu0 %v3394_v40 }
 0x112   : > { %2228 = vmatpush1.bf16.xpose.msra.mxu0 %v3460_v41  ;;  %2245 = vmatprep.mubr.bf16.mxu0 %v3341_v45  ;;  %v374_v41 = vld [vmem:[#allocation5 + $0x410] sm:$0xff] }
 0x113   : > { %2655 = vmatmul.mubr.bf16.gmra.mrb[28].mxu1 %v3394_v40  ;;  %2229 = vmatprep.subr.bf16.mxu0 %v3469_v43  ;;  %v250_v40 = vld [vmem:[#allocation5 + $0x30] sm:$0xff]  ;;  %v3524_v43 = vcombine.low %v365_v31, %v369_v32  ;;  %v3567_v31 = vcombine.high %v406_v23, %v410_v24 }
 0x114   : > { %2680 = vmatpush1.bf16.xpose.msra.mxu1 %v3588_v42  ;;  %2697 = vmatprep.mubr.bf16.mxu1 %v3341_v45  ;;  %v378_v42 = vld [vmem:[#allocation5 + $0x430] sm:$0xff]  ;;  %v3407_v45 = vcombine.high %v246_v39, %v250_v40  ;;  %v3406_v54 = vcombine.low %v246_v39, %v250_v40  ;;  %v225_v39 = vld [vmem:[%s4286_s3 + $0x168] sm:$0xff] }
 0x115   : > { %2681 = vmatprep.subr.bf16.mxu1 %v3597_v44  ;;  %v3652_v44 = vcombine.low %v493_v33, %v497_v35  ;;  %v3535_v46 = vcombine.high %v374_v41, %v378_v42  ;;  %v3534_v55 = vcombine.low %v374_v41, %v378_v42  ;;  %v286_v33 = vld [vmem:[#allocation5 + $0x150] sm:$0xff]  ;;  %v3566_v41 = vcombine.low %v406_v23, %v410_v24 }
 0x116   : > { %v290_v35 = vld [vmem:[#allocation5 + $0x170] sm:$0xff] }
 0x117   : > { %v3447_v42 = vcombine.high %v286_v33, %v290_v35 }
 0x11a   : > { %2230 = vmatpush1.bf16.xpose.msra.mxu0 %v3468_v50  ;;  %v258_v50 = vld [vmem:[#allocation5 + $0x70] sm:$0xff] }
 0x11b   : > { %2231 = vmatprep.subr.bf16.mxu0 %v3477_v52  ;;  %v4336_v52 = vcombine.low %v4329_v47, %v4332_v48 }
 0x11c   : > { %2682 = vmatpush1.bf16.xpose.msra.mxu1 %v3596_v51  ;;  %v382_v51 = vld [vmem:[#allocation5 + $0x450] sm:$0xff] }
 0x11d   : > { %2683 = vmatprep.subr.bf16.mxu1 %v3605_v53  ;;  %v386_v53 = vld [vmem:[#allocation5 + $0x470] sm:$0xff] }
 0x122   : > { %2232 = vmatpush1.bf16.xpose.msra.mxu0 %v3476_v56  ;;  %v3415_v56 = vcombine.high %v254_v49, %v258_v50 }
 0x123   : > { %2233 = vmatprep.subr.bf16.mxu0 %v3485_v58  ;;  %v3349_v58 = vcombine.high %v189_v11, %v193_v12  ;;  %v233_v11 = vld [vmem:[%s4286_s3 + $0x1a8] sm:$0xff]  ;;  %v3446_v12 = vcombine.low %v286_v33, %v290_v35  ;;  %v338_v33 = vld [vmem:[#allocation5 + $0x2f0] sm:$0xff] }
 0x124   : > { %2684 = vmatpush1.bf16.xpose.msra.mxu1 %v3604_v57  ;;  %v3543_v57 = vcombine.high %v382_v51, %v386_v53  ;;  %v462_v35 = vld [vmem:[#allocation5 + $0x6d0] sm:$0xff] }
 0x125   : > { %2685 = vmatprep.subr.bf16.mxu1 %v3613_v59  ;;  %v262_v59 = vld [vmem:[#allocation5 + $0x90] sm:$0xff] }
 0x126   : > { %v3423_v4 = vcombine.high %v262_v59, %v266_v60  ;;  %v3422_v15 = vcombine.low %v262_v59, %v266_v60  ;;  %v306_v59 = vld [vmem:[#allocation5 + $0x1f0] sm:$0xff] }
 0x127   : > { %v430_v60 = vld [vmem:[#allocation5 + $0x5d0] sm:$0xff] }
 0x12a   : > { %2234 = vmatpush1.bf16.xpose.msra.mxu0 %v3484_v0  ;;  %v197_v0 = vld [vmem:[%s4286_s3 + $0x88] sm:$0xff] }
 0x12b   : > { %2235 = vmatprep.subr.bf16.mxu0 %v3493_v2  ;;  %v3414_v2 = vcombine.low %v254_v49, %v258_v50  ;;  %v422_v49 = vld [vmem:[#allocation5 + $0x590] sm:$0xff] }
 0x12c   : > { %2686 = vmatpush1.bf16.xpose.msra.mxu1 %v3612_v1  ;;  %v201_v1 = vld [vmem:[%s4286_s3 + $0xa8] sm:$0xff]  ;;  %v426_v50 = vld [vmem:[#allocation5 + $0x5b0] sm:$0xff] }
 0x12d   : > { %2687 = vmatprep.subr.bf16.mxu1 %v3621_v3  ;;  %v3542_v3 = vcombine.low %v382_v51, %v386_v53  ;;  %v3357_v6 = vcombine.high %v197_v0, %v201_v1  ;;  %v229_v53 = vld [vmem:[%s4286_s3 + $0x188] sm:$0xff] }
 0x12e   : > { %v3388_v62 = vcombine.low %v229_v53, %v233_v11 }
 0x132   : > { %2236 = vmatpush1.bf16.xpose.msra.mxu0 %v3492_v8  ;;  %v398_v8 = vld [vmem:[#allocation5 + $0x4d0] sm:$0xff] }
 0x133   : > { %2237 = vmatprep.subr.bf16.mxu0 %v3501_v10  ;;  %v3356_v10 = vcombine.low %v197_v0, %v201_v1  ;;  %v241_v0 = vld [vmem:[%s4286_s3 + $0x1e8] sm:$0xff] }
 0x134   : > { %2688 = vmatpush1.bf16.xpose.msra.mxu1 %v3620_v9  ;;  %v402_v9 = vld [vmem:[#allocation5 + $0x4f0] sm:$0xff] }
 0x135   : > { %2689 = vmatprep.subr.bf16.mxu1 %v3629_v13  ;;  %v205_v13 = vld [vmem:[%s4286_s3 + $0xc8] sm:$0xff] }
 0x136   : > { %v3364_v25 = vcombine.low %v205_v13, %v209_v14 }
 0x13a   : > { %2238 = vmatpush1.bf16.xpose.msra.mxu0 %v3500_v19  ;;  %v3559_v19 = vcombine.high %v398_v8, %v402_v9 }
 0x13b   : > { %2239 = vmatprep.subr.bf16.mxu0 %v3509_v21  ;;  %v278_v21 = vld [vmem:[#allocation5 + $0x110] sm:$0xff] }
 0x13c   : > { %2690 = vmatpush1.bf16.xpose.msra.mxu1 %v3628_v20  ;;  %v3365_v20 = vcombine.high %v205_v13, %v209_v14  ;;  %v3590_v13 = vcombine.low %v430_v60, %v434_v61 }
 0x13d   : > { %2691 = vmatprep.subr.bf16.mxu1 %v3637_v22  ;;  %v282_v22 = vld [vmem:[#allocation5 + $0x130] sm:$0xff] }
 0x13e   : > { %v3438_v40 = vcombine.low %v278_v21, %v282_v22 }
 0x142   : > { %2240 = vmatpush1.bf16.xpose.msra.mxu0 %v3508_v27  ;;  %v217_v27 = vld [vmem:[%s4286_s3 + $0x128] sm:$0xff] }
 0x143   : > { %2241 = vmatprep.subr.bf16.mxu0 %v3517_v29  ;;  %v3558_v29 = vcombine.low %v398_v8, %v402_v9  ;;  %v3373_v32 = vcombine.high %v213_v26, %v217_v27  ;;  %v442_v8 = vld [vmem:[#allocation5 + $0x630] sm:$0xff] }
 0x144   : > { %2692 = vmatpush1.bf16.xpose.msra.mxu1 %v3636_v28 }
 0x145   : > { %2693 = vmatprep.subr.bf16.mxu1 %v3645_v30  ;;  %v3439_v30 = vcombine.high %v278_v21, %v282_v22  ;;  %v450_v21 = vld [vmem:[#allocation5 + $0x670] sm:$0xff] }
 0x14a   : > { %2242 = vmatpush1.bf16.xpose.msra.mxu0 %v3516_v36  ;;  %v414_v36 = vld [vmem:[#allocation5 + $0x550] sm:$0xff] }
 0x14b   : > { %2243 = vmatprep.subr.bf16.mxu0 %v3525_v34  ;;  %v3372_v34 = vcombine.low %v213_v26, %v217_v27  ;;  %v454_v26 = vld [vmem:[#allocation5 + $0x690] sm:$0xff] }
 0x14c   : > { %2694 = vmatpush1.bf16.xpose.msra.mxu1 %v3644_v37  ;;  %v418_v37 = vld [vmem:[#allocation5 + $0x570] sm:$0xff] }
 0x14d   : > { %2695 = vmatprep.subr.bf16.mxu1 %v3653_v38  ;;  %v221_v38 = vld [vmem:[%s4286_s3 + $0x148] sm:$0xff]  ;;  %v458_v27 = vld [vmem:[#allocation5 + $0x6b0] sm:$0xff] }
 0x14e   : > { %v3380_v51 = vcombine.low %v221_v38, %v225_v39 }
 0x152   : > { %2244 = vmatpush1.bf16.xpose.msra.mxu0 %v3524_v43  ;;  %v3575_v43 = vcombine.high %v414_v36, %v418_v37 }
 0x153   : > { %2326 = vmatprep.subr.bf16.mxu0 %v3407_v45  ;;  %v294_v45 = vld [vmem:[#allocation5 + $0x190] sm:$0xff] }
 0x154   : > { %2696 = vmatpush1.bf16.xpose.msra.mxu1 %v3652_v44  ;;  %v3381_v44 = vcombine.high %v221_v38, %v225_v39 }
 0x155   : > { %2778 = vmatprep.subr.bf16.mxu1 %v3535_v46  ;;  %v298_v46 = vld [vmem:[#allocation5 + $0x1b0] sm:$0xff] }
 0x156   : > { %v3454_v1 = vcombine.low %v294_v45, %v298_v46 }
 0x159   : > { %2246 = vmatmul.mubr.bf16.vlgmr.msra.gmra.mrb[0].mxu0 %v4308_v16 }
 0x15a   : > { %2327 = vmatpush1.bf16.xpose.msra.mxu0 %v3406_v54  ;;  %2255 = vmatprep.mubr.bf16.mxu0 %v3349_v58  ;;  %v3574_v54 = vcombine.low %v414_v36, %v418_v37  ;;  %v466_v36 = vld [vmem:[#allocation5 + $0x6f0] sm:$0xff] }
 0x15b   : > { %2698 = vmatmul.mubr.bf16.vlgmr.msra.gmra.mrb[0].mxu1 %v4308_v16  ;;  %2328 = vmatprep.subr.bf16.mxu0 %v3415_v56  ;;  %v270_v16 = vld [vmem:[#allocation5 + $0xd0] sm:$0xff]  ;;  %v3583_v56 = vcombine.high %v422_v49, %v426_v50  ;;  %v3623_v39 = vcombine.high %v462_v35, %v466_v36 }
 0x15c   : > { %2779 = vmatpush1.bf16.xpose.msra.mxu1 %v3534_v55  ;;  %2707 = vmatprep.mubr.bf16.mxu1 %v3349_v58  ;;  %v3431_v18 = vcombine.high %v270_v16, %v274_v7  ;;  %v3430_v28 = vcombine.low %v270_v16, %v274_v7  ;;  %v3455_v55 = vcombine.high %v294_v45, %v298_v46  ;;  %v302_v58 = vld [vmem:[#allocation5 + $0x1d0] sm:$0xff] }
 0x15d   : > { %2780 = vmatprep.subr.bf16.mxu1 %v3543_v57  ;;  %v3389_v57 = vcombine.high %v229_v53, %v233_v11  ;;  %v314_v16 = vld [vmem:[#allocation5 + $0x230] sm:$0xff]  ;;  %v3622_v45 = vcombine.low %v462_v35, %v466_v36  ;;  %v395_v35 = vld [vmem:[#allocation5 + $0x4b8] sm:$0xff] }
 0x15e   : > { %v438_v7 = vld [vmem:[#allocation5 + $0x610] sm:$0xff] }
 0x15f   : > { %v3598_v23 = vcombine.low %v438_v7, %v442_v8  ;;  %v478_v53 = vld [vmem:[#allocation5 + $0x750] sm:$0xff] }
 0x160   : > { %v482_v11 = vld [vmem:[#allocation5 + $0x770] sm:$0xff] }
 0x161   : > { %2256 = vmatmul.mubr.bf16.gmra.mrb[4].mxu0 %v3348_v63 }
 0x162   : > { %2329 = vmatpush1.bf16.xpose.msra.mxu0 %v3414_v2  ;;  %2265 = vmatprep.mubr.bf16.mxu0 %v3357_v6  ;;  %v3582_v2 = vcombine.low %v422_v49, %v426_v50  ;;  %v350_v50 = vld [vmem:[#allocation5 + $0x350] sm:$0xff] }
 0x163   : > { %2708 = vmatmul.mubr.bf16.gmra.mrb[4].mxu1 %v3348_v63  ;;  %2330 = vmatprep.subr.bf16.mxu0 %v3423_v4  ;;  %v237_v63 = vld [vmem:[%s4286_s3 + $0x1c8] sm:$0xff]  ;;  %v3591_v4 = vcombine.high %v430_v60, %v434_v61  ;;  %v490_v60 = vld [vmem:[#allocation5 + $0x7b0] sm:$0xff] }
 0x164   : > { %2781 = vmatpush1.bf16.xpose.msra.mxu1 %v3542_v3  ;;  %2717 = vmatprep.mubr.bf16.mxu1 %v3357_v6  ;;  %v3463_v3 = vcombine.high %v302_v58, %v306_v59  ;;  %v310_v6 = vld [vmem:[#allocation5 + $0x210] sm:$0xff]  ;;  %v3396_v9 = vcombine.low %v237_v63, %v241_v0 }
 0x165   : > { %2782 = vmatprep.subr.bf16.mxu1 %v3551_v5  ;;  %v3397_v5 = vcombine.high %v237_v63, %v241_v0  ;;  %v3471_v14 = vcombine.high %v310_v6, %v314_v16  ;;  %v3470_v22 = vcombine.low %v310_v6, %v314_v16 }
 0x169   : > { %2266 = vmatmul.mubr.bf16.gmra.mrb[8].mxu0 %v3356_v10 }
 0x16a   : > { %2331 = vmatpush1.bf16.xpose.msra.mxu0 %v3422_v15  ;;  %2275 = vmatprep.mubr.bf16.mxu0 %v3365_v20  ;;  %v3599_v15 = vcombine.high %v438_v7, %v442_v8  ;;  %v247_v8 = vld [vmem:[#allocation5 + $0x18] sm:$0xff] }
 0x16b   : > { %2718 = vmatmul.mubr.bf16.gmra.mrb[8].mxu1 %v3356_v10  ;;  %2332 = vmatprep.subr.bf16.mxu0 %v3431_v18  ;;  %v3462_v10 = vcombine.low %v302_v58, %v306_v59  ;;  %v318_v18 = vld [vmem:[#allocation5 + $0x250] sm:$0xff] }
 0x16c   : > { %2783 = vmatpush1.bf16.xpose.msra.mxu1 %v3550_v17  ;;  %2727 = vmatprep.mubr.bf16.mxu1 %v3365_v20  ;;  %v3343_v17 = vcombine.high %v4329_v47, %v4332_v48  ;;  %v446_v20 = vld [vmem:[#allocation5 + $0x650] sm:$0xff] }
 0x16d   : > { %2784 = vmatprep.subr.bf16.mxu1 %v3559_v19  ;;  %v322_v19 = vld [vmem:[#allocation5 + $0x270] sm:$0xff] }
 0x16e   : > { %v3479_v24 = vcombine.high %v318_v18, %v322_v19  ;;  %v326_v47 = vld [vmem:[#allocation5 + $0x290] sm:$0xff] }
 0x16f   : > { %v330_v48 = vld [vmem:[#allocation5 + $0x2b0] sm:$0xff] }
 0x170   : > { %v3486_v37 = vcombine.low %v326_v47, %v330_v48  ;;  %v362_v58 = vld [vmem:[#allocation5 + $0x3b0] sm:$0xff] }
 0x171   : > { %2276 = vmatmul.mubr.bf16.gmra.mrb[12].mxu0 %v3364_v25  ;;  %v486_v59 = vld [vmem:[#allocation5 + $0x790] sm:$0xff] }
 0x172   : > { %2333 = vmatpush1.bf16.xpose.msra.mxu0 %v3430_v28  ;;  %2285 = vmatprep.mubr.bf16.mxu0 %v3373_v32  ;;  %v3478_v28 = vcombine.low %v318_v18, %v322_v19  ;;  %v3647_v0 = vcombine.high %v486_v59, %v490_v60  ;;  %v3646_v6 = vcombine.low %v486_v59, %v490_v60  ;;  %v4357_v19 = vld [vmem:[%s4286_s3 + $0x18] sm:$0xff]  ;;  %v214_v60 = vld [vmem:[%s4286_s3 + $0x110] sm:$0xff] }
 0x173   : > { %2728 = vmatmul.mubr.bf16.gmra.mrb[12].mxu1 %v3364_v25  ;;  %2334 = vmatprep.subr.bf16.mxu0 %v3439_v30  ;;  %v3607_v25 = vcombine.high %v446_v20, %v450_v21  ;;  %v3487_v30 = vcombine.high %v326_v47, %v330_v48  ;;  %v190_v47 = vld [vmem:[%s4286_s3 + $0x50] sm:$0xff] }
 0x174   : > { %2785 = vmatpush1.bf16.xpose.msra.mxu1 %v3558_v29  ;;  %2737 = vmatprep.mubr.bf16.mxu1 %v3373_v32  ;;  %v3606_v29 = vcombine.low %v446_v20, %v450_v21  ;;  %v334_v32 = vld [vmem:[#allocation5 + $0x2d0] sm:$0xff]  ;;  %v4360_v20 = vld [vmem:[%s4286_s3 + $0x38] sm:$0xff] }
 0x175   : > { %2786 = vmatprep.subr.bf16.mxu1 %v3567_v31  ;;  %v3615_v31 = vcombine.high %v454_v26, %v458_v27  ;;  %v3495_v38 = vcombine.high %v334_v32, %v338_v33  ;;  %v255_v21 = vld [vmem:[#allocation5 + $0x58] sm:$0xff]  ;;  %v194_v48 = vld [vmem:[%s4286_s3 + $0x70] sm:$0xff] }
 0x176   : > { %v3350_v36 = vcombine.low %v190_v47, %v194_v48 }
 0x179   : > { %2286 = vmatmul.mubr.bf16.gmra.mrb[16].mxu0 %v3372_v34 }
 0x17a   : > { %2335 = vmatpush1.bf16.xpose.msra.mxu0 %v3438_v40  ;;  %2295 = vmatprep.mubr.bf16.mxu0 %v3381_v44  ;;  %v342_v40 = vld [vmem:[#allocation5 + $0x310] sm:$0xff] }
 0x17b   : > { %2738 = vmatmul.mubr.bf16.gmra.mrb[16].mxu1 %v3372_v34  ;;  %2336 = vmatprep.subr.bf16.mxu0 %v3447_v42  ;;  %v3614_v34 = vcombine.low %v454_v26, %v458_v27  ;;  %v470_v42 = vld [vmem:[#allocation5 + $0x710] sm:$0xff] }
 0x17c   : > { %2787 = vmatpush1.bf16.xpose.msra.mxu1 %v3566_v41  ;;  %2747 = vmatprep.mubr.bf16.mxu1 %v3381_v44  ;;  %v346_v41 = vld [vmem:[#allocation5 + $0x330] sm:$0xff]  ;;  %v3494_v44 = vcombine.low %v334_v32, %v338_v33  ;;  %v267_v32 = vld [vmem:[#allocation5 + $0xb8] sm:$0xff] }
 0x17d   : > { %2788 = vmatprep.subr.bf16.mxu1 %v3575_v43  ;;  %v474_v43 = vld [vmem:[#allocation5 + $0x730] sm:$0xff]  ;;  %v3503_v46 = vcombine.high %v342_v40, %v346_v41  ;;  %v391_v33 = vld [vmem:[#allocation5 + $0x498] sm:$0xff] }
 0x17e   : > { %v3631_v49 = vcombine.high %v470_v42, %v474_v43 }
 0x181   : > { %2296 = vmatmul.mubr.bf16.gmra.mrb[20].mxu0 %v3380_v51 }
 0x182   : > { %2337 = vmatpush1.bf16.xpose.msra.mxu0 %v3446_v12  ;;  %2305 = vmatprep.mubr.bf16.mxu0 %v3389_v57  ;;  %v3502_v12 = vcombine.low %v342_v40, %v346_v41  ;;  %v3553_v41 = vcombine.high %v391_v33, %v395_v35 }
 0x183   : > { %2748 = vmatmul.mubr.bf16.gmra.mrb[20].mxu1 %v3380_v51  ;;  %2338 = vmatprep.subr.bf16.mxu0 %v3455_v55  ;;  %v354_v51 = vld [vmem:[#allocation5 + $0x370] sm:$0xff] }
 0x184   : > { %2789 = vmatpush1.bf16.xpose.msra.mxu1 %v3574_v54  ;;  %2757 = vmatprep.mubr.bf16.mxu1 %v3389_v57  ;;  %v3630_v54 = vcombine.low %v470_v42, %v474_v43  ;;  %v3511_v55 = vcombine.high %v350_v50, %v354_v51  ;;  %v358_v57 = vld [vmem:[#allocation5 + $0x390] sm:$0xff]  ;;  %v3510_v61 = vcombine.low %v350_v50, %v354_v51  ;;  %v275_v43 = vld [vmem:[#allocation5 + $0xf8] sm:$0xff] }
 0x185   : > { %2790 = vmatprep.subr.bf16.mxu1 %v3583_v56  ;;  %v3639_v56 = vcombine.high %v478_v53, %v482_v11  ;;  %v3519_v63 = vcombine.high %v358_v57, %v362_v58  ;;  %v210_v50 = vld [vmem:[%s4286_s3 + $0xf0] sm:$0xff] }
 0x189   : > { %2306 = vmatmul.mubr.bf16.gmra.mrb[24].mxu0 %v3388_v62 }
 0x18a   : > { %2339 = vmatpush1.bf16.xpose.msra.mxu0 %v3454_v1  ;;  %2315 = vmatprep.mubr.bf16.mxu0 %v3397_v5  ;;  %v366_v1 = vld [vmem:[#allocation5 + $0x3d0] sm:$0xff] }
 0x18b   : > { %2758 = vmatmul.mubr.bf16.gmra.mrb[24].mxu1 %v3388_v62  ;;  %2340 = vmatprep.subr.bf16.mxu0 %v3463_v3  ;;  %v3638_v62 = vcombine.low %v478_v53, %v482_v11  ;;  %v494_v3 = vld [vmem:[#allocation5 + $0x7d0] sm:$0xff]  ;;  %v3552_v53 = vcombine.low %v391_v33, %v395_v35  ;;  %v435_v33 = vld [vmem:[#allocation5 + $0x5f8] sm:$0xff] }
 0x18c   : > { %2791 = vmatpush1.bf16.xpose.msra.mxu1 %v3582_v2  ;;  %2767 = vmatprep.mubr.bf16.mxu1 %v3397_v5  ;;  %v370_v2 = vld [vmem:[#allocation5 + $0x3f0] sm:$0xff]  ;;  %v3518_v5 = vcombine.low %v358_v57, %v362_v58  ;;  %v407_v57 = vld [vmem:[#allocation5 + $0x518] sm:$0xff] }
 0x18d   : > { %2792 = vmatprep.subr.bf16.mxu1 %v3591_v4  ;;  %v498_v4 = vld [vmem:[#allocation5 + $0x7f0] sm:$0xff]  ;;  %v3527_v16 = vcombine.high %v366_v1, %v370_v2  ;;  %v411_v58 = vld [vmem:[#allocation5 + $0x538] sm:$0xff] }
 0x18e   : > { %v3655_v7 = vcombine.high %v494_v3, %v498_v4 }
 0x191   : > { %2316 = vmatmul.mubr.bf16.gmra.mrb[28].mxu0 %v3396_v9 }
 0x192   : > { %2341 = vmatpush1.bf16.xpose.msra.mxu0 %v3462_v10  ;;  %2358 = vmatprep.mubr.bf16.mxu0 %v3343_v17  ;;  %v375_v10 = vld [vmem:[#allocation5 + $0x418] sm:$0xff] }
 0x193   : > { %2768 = vmatmul.mubr.bf16.gmra.mrb[28].mxu1 %v3396_v9  ;;  %2342 = vmatprep.subr.bf16.mxu0 %v3471_v14  ;;  %v251_v9 = vld [vmem:[#allocation5 + $0x38] sm:$0xff]  ;;  %v3526_v14 = vcombine.low %v366_v1, %v370_v2  ;;  %v3569_v1 = vcombine.high %v407_v57, %v411_v58 }
 0x194   : > { %2793 = vmatpush1.bf16.xpose.msra.mxu1 %v3590_v13  ;;  %2810 = vmatprep.mubr.bf16.mxu1 %v3343_v17  ;;  %v379_v13 = vld [vmem:[#allocation5 + $0x438] sm:$0xff]  ;;  %v3409_v17 = vcombine.high %v247_v8, %v251_v9  ;;  %v3408_v26 = vcombine.low %v247_v8, %v251_v9  ;;  %v226_v8 = vld [vmem:[%s4286_s3 + $0x170] sm:$0xff] }
 0x195   : > { %2794 = vmatprep.subr.bf16.mxu1 %v3599_v15  ;;  %v3654_v15 = vcombine.low %v494_v3, %v498_v4  ;;  %v3537_v18 = vcombine.high %v375_v10, %v379_v13  ;;  %v3536_v27 = vcombine.low %v375_v10, %v379_v13  ;;  %v287_v3 = vld [vmem:[#allocation5 + $0x158] sm:$0xff]  ;;  %v3568_v10 = vcombine.low %v407_v57, %v411_v58 }
 0x196   : > { %v291_v4 = vld [vmem:[#allocation5 + $0x178] sm:$0xff] }
 0x197   : > { %v3449_v13 = vcombine.high %v287_v3, %v291_v4 }
 0x19a   : > { %2343 = vmatpush1.bf16.xpose.msra.mxu0 %v3470_v22  ;;  %v259_v22 = vld [vmem:[#allocation5 + $0x78] sm:$0xff] }
 0x19b   : > { %2344 = vmatprep.subr.bf16.mxu0 %v3479_v24  ;;  %v4364_v24 = vcombine.low %v4357_v19, %v4360_v20 }
 0x19c   : > { %2795 = vmatpush1.bf16.xpose.msra.mxu1 %v3598_v23  ;;  %v383_v23 = vld [vmem:[#allocation5 + $0x458] sm:$0xff] }
 0x19d   : > { %2796 = vmatprep.subr.bf16.mxu1 %v3607_v25  ;;  %v387_v25 = vld [vmem:[#allocation5 + $0x478] sm:$0xff] }
 0x1a2   : > { %2345 = vmatpush1.bf16.xpose.msra.mxu0 %v3478_v28  ;;  %v3417_v28 = vcombine.high %v255_v21, %v259_v22 }
 0x1a3   : > { %2346 = vmatprep.subr.bf16.mxu0 %v3487_v30  ;;  %v3351_v30 = vcombine.high %v190_v47, %v194_v48  ;;  %v234_v47 = vld [vmem:[%s4286_s3 + $0x1b0] sm:$0xff]  ;;  %v3448_v48 = vcombine.low %v287_v3, %v291_v4  ;;  %v339_v3 = vld [vmem:[#allocation5 + $0x2f8] sm:$0xff] }
 0x1a4   : > { %2797 = vmatpush1.bf16.xpose.msra.mxu1 %v3606_v29  ;;  %v3545_v29 = vcombine.high %v383_v23, %v387_v25  ;;  %v463_v4 = vld [vmem:[#allocation5 + $0x6d8] sm:$0xff] }
 0x1a5   : > { %2798 = vmatprep.subr.bf16.mxu1 %v3615_v31  ;;  %v263_v31 = vld [vmem:[#allocation5 + $0x98] sm:$0xff] }
 0x1a6   : > { %v3425_v40 = vcombine.high %v263_v31, %v267_v32  ;;  %v3424_v51 = vcombine.low %v263_v31, %v267_v32  ;;  %v307_v31 = vld [vmem:[#allocation5 + $0x1f8] sm:$0xff] }
 0x1a7   : > { %v431_v32 = vld [vmem:[#allocation5 + $0x5d8] sm:$0xff] }
 0x1aa   : > { %2347 = vmatpush1.bf16.xpose.msra.mxu0 %v3486_v37  ;;  %v198_v37 = vld [vmem:[%s4286_s3 + $0x90] sm:$0xff] }
 0x1ab   : > { %2348 = vmatprep.subr.bf16.mxu0 %v3495_v38  ;;  %v3416_v38 = vcombine.low %v255_v21, %v259_v22  ;;  %v423_v21 = vld [vmem:[#allocation5 + $0x598] sm:$0xff] }
 0x1ac   : > { %2799 = vmatpush1.bf16.xpose.msra.mxu1 %v3614_v34  ;;  %v202_v34 = vld [vmem:[%s4286_s3 + $0xb0] sm:$0xff]  ;;  %v427_v22 = vld [vmem:[#allocation5 + $0x5b8] sm:$0xff] }
 0x1ad   : > { %2800 = vmatprep.subr.bf16.mxu1 %v3623_v39  ;;  %v3544_v39 = vcombine.low %v383_v23, %v387_v25  ;;  %v3359_v42 = vcombine.high %v198_v37, %v202_v34  ;;  %v230_v25 = vld [vmem:[%s4286_s3 + $0x190] sm:$0xff] }
 0x1ae   : > { %v3390_v35 = vcombine.low %v230_v25, %v234_v47 }
 0x1b2   : > { %2349 = vmatpush1.bf16.xpose.msra.mxu0 %v3494_v44  ;;  %v399_v44 = vld [vmem:[#allocation5 + $0x4d8] sm:$0xff] }
 0x1b3   : > { %2350 = vmatprep.subr.bf16.mxu0 %v3503_v46  ;;  %v3358_v46 = vcombine.low %v198_v37, %v202_v34  ;;  %v242_v37 = vld [vmem:[%s4286_s3 + $0x1f0] sm:$0xff] }
 0x1b4   : > { %2801 = vmatpush1.bf16.xpose.msra.mxu1 %v3622_v45  ;;  %v403_v45 = vld [vmem:[#allocation5 + $0x4f8] sm:$0xff] }
 0x1b5   : > { %2802 = vmatprep.subr.bf16.mxu1 %v3631_v49  ;;  %v206_v49 = vld [vmem:[%s4286_s3 + $0xd0] sm:$0xff] }
 0x1b6   : > { %v3366_v59 = vcombine.low %v206_v49, %v210_v50 }
 0x1ba   : > { %2351 = vmatpush1.bf16.xpose.msra.mxu0 %v3502_v12  ;;  %v3561_v12 = vcombine.high %v399_v44, %v403_v45 }
 0x1bb   : > { %2352 = vmatprep.subr.bf16.mxu0 %v3511_v55  ;;  %v279_v55 = vld [vmem:[#allocation5 + $0x118] sm:$0xff] }
 0x1bc   : > { %2803 = vmatpush1.bf16.xpose.msra.mxu1 %v3630_v54  ;;  %v3367_v54 = vcombine.high %v206_v49, %v210_v50  ;;  %v3592_v49 = vcombine.low %v431_v32, %v435_v33 }
 0x1bd   : > { %2804 = vmatprep.subr.bf16.mxu1 %v3639_v56  ;;  %v283_v56 = vld [vmem:[#allocation5 + $0x138] sm:$0xff] }
 0x1be   : > { %v3440_v9 = vcombine.low %v279_v55, %v283_v56 }
 0x1c2   : > { %2353 = vmatpush1.bf16.xpose.msra.mxu0 %v3510_v61  ;;  %v218_v61 = vld [vmem:[%s4286_s3 + $0x130] sm:$0xff] }
 0x1c3   : > { %2354 = vmatprep.subr.bf16.mxu0 %v3519_v63  ;;  %v3560_v63 = vcombine.low %v399_v44, %v403_v45  ;;  %v3375_v2 = vcombine.high %v214_v60, %v218_v61  ;;  %v443_v44 = vld [vmem:[#allocation5 + $0x638] sm:$0xff] }
 0x1c4   : > { %2805 = vmatpush1.bf16.xpose.msra.mxu1 %v3638_v62 }
 0x1c5   : > { %2806 = vmatprep.subr.bf16.mxu1 %v3647_v0  ;;  %v3441_v0 = vcombine.high %v279_v55, %v283_v56  ;;  %v451_v55 = vld [vmem:[#allocation5 + $0x678] sm:$0xff] }
 0x1ca   : > { %2355 = vmatpush1.bf16.xpose.msra.mxu0 %v3518_v5  ;;  %v415_v5 = vld [vmem:[#allocation5 + $0x558] sm:$0xff] }
 0x1cb   : > { %2356 = vmatprep.subr.bf16.mxu0 %v3527_v16  ;;  %v3374_v16 = vcombine.low %v214_v60, %v218_v61  ;;  %v455_v60 = vld [vmem:[#allocation5 + $0x698] sm:$0xff] }
 0x1cc   : > { %2807 = vmatpush1.bf16.xpose.msra.mxu1 %v3646_v6  ;;  %v419_v6 = vld [vmem:[#allocation5 + $0x578] sm:$0xff] }
 0x1cd   : > { %2808 = vmatprep.subr.bf16.mxu1 %v3655_v7  ;;  %v222_v7 = vld [vmem:[%s4286_s3 + $0x150] sm:$0xff]  ;;  %v459_v61 = vld [vmem:[#allocation5 + $0x6b8] sm:$0xff] }
 0x1ce   : > { %v3382_v23 = vcombine.low %v222_v7, %v226_v8 }
 0x1d2   : > { %2357 = vmatpush1.bf16.xpose.msra.mxu0 %v3526_v14  ;;  %v3577_v14 = vcombine.high %v415_v5, %v419_v6 }
 0x1d3   : > { %2439 = vmatprep.subr.bf16.mxu0 %v3409_v17  ;;  %v295_v17 = vld [vmem:[#allocation5 + $0x198] sm:$0xff] }
 0x1d4   : > { %2809 = vmatpush1.bf16.xpose.msra.mxu1 %v3654_v15  ;;  %v3383_v15 = vcombine.high %v222_v7, %v226_v8 }
 0x1d5   : > { %2891 = vmatprep.subr.bf16.mxu1 %v3537_v18  ;;  %v299_v18 = vld [vmem:[#allocation5 + $0x1b8] sm:$0xff] }
 0x1d6   : > { %v3456_v34 = vcombine.low %v295_v17, %v299_v18 }
 0x1d9   : > { %2359 = vmatmul.mubr.bf16.vlgmr.msra.gmra.mrb[0].mxu0 %v4336_v52 }
 0x1da   : > { %2440 = vmatpush1.bf16.xpose.msra.mxu0 %v3408_v26  ;;  %2368 = vmatprep.mubr.bf16.mxu0 %v3351_v30  ;;  %v3576_v26 = vcombine.low %v415_v5, %v419_v6  ;;  %v467_v5 = vld [vmem:[#allocation5 + $0x6f8] sm:$0xff] }
 0x1db   : > { %2811 = vmatmul.mubr.bf16.vlgmr.msra.gmra.mrb[0].mxu1 %v4336_v52  ;;  %2441 = vmatprep.subr.bf16.mxu0 %v3417_v28  ;;  %v271_v52 = vld [vmem:[#allocation5 + $0xd8] sm:$0xff]  ;;  %v3585_v28 = vcombine.high %v423_v21, %v427_v22  ;;  %v3625_v8 = vcombine.high %v463_v4, %v467_v5 }
 0x1dc   : > { %2892 = vmatpush1.bf16.xpose.msra.mxu1 %v3536_v27  ;;  %2820 = vmatprep.mubr.bf16.mxu1 %v3351_v30  ;;  %v3433_v11 = vcombine.high %v271_v52, %v275_v43  ;;  %v3432_v62 = vcombine.low %v271_v52, %v275_v43  ;;  %v3457_v27 = vcombine.high %v295_v17, %v299_v18  ;;  %v303_v30 = vld [vmem:[#allocation5 + $0x1d8] sm:$0xff] }
 0x1dd   : > { %2893 = vmatprep.subr.bf16.mxu1 %v3545_v29  ;;  %v3391_v29 = vcombine.high %v230_v25, %v234_v47  ;;  %v315_v52 = vld [vmem:[#allocation5 + $0x238] sm:$0xff]  ;;  %v3624_v17 = vcombine.low %v463_v4, %v467_v5 }
 0x1de   : > { %v439_v43 = vld [vmem:[#allocation5 + $0x618] sm:$0xff] }
 0x1df   : > { %v3600_v57 = vcombine.low %v439_v43, %v443_v44  ;;  %v479_v25 = vld [vmem:[#allocation5 + $0x758] sm:$0xff] }
 0x1e0   : > { %v483_v47 = vld [vmem:[#allocation5 + $0x778] sm:$0xff] }
 0x1e1   : > { %2369 = vmatmul.mubr.bf16.gmra.mrb[4].mxu0 %v3350_v36  ;;  %v243_v4 = vld [vmem:[%s4286_s3 + $0x1f8] sm:$0xff] }
 0x1e2   : > { %2442 = vmatpush1.bf16.xpose.msra.mxu0 %v3416_v38  ;;  %2378 = vmatprep.mubr.bf16.mxu0 %v3359_v42  ;;  %v3584_v38 = vcombine.low %v423_v21, %v427_v22  ;;  %v351_v22 = vld [vmem:[#allocation5 + $0x358] sm:$0xff] }
 0x1e3   : > { %2821 = vmatmul.mubr.bf16.gmra.mrb[4].mxu1 %v3350_v36  ;;  %2443 = vmatprep.subr.bf16.mxu0 %v3425_v40  ;;  %v238_v36 = vld [vmem:[%s4286_s3 + $0x1d0] sm:$0xff]  ;;  %v3593_v40 = vcombine.high %v431_v32, %v435_v33  ;;  %v491_v32 = vld [vmem:[#allocation5 + $0x7b8] sm:$0xff] }
 0x1e4   : > { %2894 = vmatpush1.bf16.xpose.msra.mxu1 %v3544_v39  ;;  %2830 = vmatprep.mubr.bf16.mxu1 %v3359_v42  ;;  %v3465_v39 = vcombine.high %v303_v30, %v307_v31  ;;  %v311_v42 = vld [vmem:[#allocation5 + $0x218] sm:$0xff]  ;;  %v3398_v45 = vcombine.low %v238_v36, %v242_v37 }
 0x1e5   : > { %2895 = vmatprep.subr.bf16.mxu1 %v3553_v41  ;;  %v3399_v41 = vcombine.high %v238_v36, %v242_v37  ;;  %v3473_v50 = vcombine.high %v311_v42, %v315_v52  ;;  %v3472_v56 = vcombine.low %v311_v42, %v315_v52 }
 0x1e9   : > { %2379 = vmatmul.mubr.bf16.gmra.mrb[8].mxu0 %v3358_v46 }
 0x1ea   : > { %2444 = vmatpush1.bf16.xpose.msra.mxu0 %v3424_v51  ;;  %2388 = vmatprep.mubr.bf16.mxu0 %v3367_v54  ;;  %v3601_v51 = vcombine.high %v439_v43, %v443_v44 }
 0x1eb   : > { %2831 = vmatmul.mubr.bf16.gmra.mrb[8].mxu1 %v3358_v46  ;;  %2445 = vmatprep.subr.bf16.mxu0 %v3433_v11  ;;  %v3464_v46 = vcombine.low %v303_v30, %v307_v31  ;;  %v319_v11 = vld [vmem:[#allocation5 + $0x258] sm:$0xff] }
 0x1ec   : > { %2896 = vmatpush1.bf16.xpose.msra.mxu1 %v3552_v53  ;;  %2840 = vmatprep.mubr.bf16.mxu1 %v3367_v54  ;;  %v3345_v53 = vcombine.high %v4357_v19, %v4360_v20  ;;  %v447_v54 = vld [vmem:[#allocation5 + $0x658] sm:$0xff] }
 0x1ed   : > { %2897 = vmatprep.subr.bf16.mxu1 %v3561_v12  ;;  %v323_v12 = vld [vmem:[#allocation5 + $0x278] sm:$0xff] }
 0x1ee   : > { %v3481_v58 = vcombine.high %v319_v11, %v323_v12  ;;  %v327_v19 = vld [vmem:[#allocation5 + $0x298] sm:$0xff] }
 0x1ef   : > { %v331_v20 = vld [vmem:[#allocation5 + $0x2b8] sm:$0xff] }
 0x1f0   : > { %v3488_v6 = vcombine.low %v327_v19, %v331_v20  ;;  %v363_v30 = vld [vmem:[#allocation5 + $0x3b8] sm:$0xff] }
 0x1f1   : > { %2389 = vmatmul.mubr.bf16.gmra.mrb[12].mxu0 %v3366_v59  ;;  %v487_v31 = vld [vmem:[#allocation5 + $0x798] sm:$0xff] }
 0x1f2   : > { %2446 = vmatpush1.bf16.xpose.msra.mxu0 %v3432_v62  ;;  %2398 = vmatprep.mubr.bf16.mxu0 %v3375_v2  ;;  %v3480_v62 = vcombine.low %v319_v11, %v323_v12  ;;  %v3649_v37 = vcombine.high %v487_v31, %v491_v32  ;;  %v3648_v42 = vcombine.low %v487_v31, %v491_v32 }
 0x1f3   : > { %2841 = vmatmul.mubr.bf16.gmra.mrb[12].mxu1 %v3366_v59  ;;  %2447 = vmatprep.subr.bf16.mxu0 %v3441_v0  ;;  %v3609_v59 = vcombine.high %v447_v54, %v451_v55  ;;  %v3489_v0 = vcombine.high %v327_v19, %v331_v20  ;;  %v223_v20 = vld [vmem:[%s4286_s3 + $0x158] sm:$0xff] }
 0x1f4   : > { %2898 = vmatpush1.bf16.xpose.msra.mxu1 %v3560_v63  ;;  %2850 = vmatprep.mubr.bf16.mxu1 %v3375_v2  ;;  %v3608_v63 = vcombine.low %v447_v54, %v451_v55  ;;  %v335_v2 = vld [vmem:[#allocation5 + $0x2d8] sm:$0xff] }
 0x1f5   : > { %2899 = vmatprep.subr.bf16.mxu1 %v3569_v1  ;;  %v3617_v1 = vcombine.high %v455_v60, %v459_v61  ;;  %v3497_v7 = vcombine.high %v335_v2, %v339_v3  ;;  %v207_v54 = vld [vmem:[%s4286_s3 + $0xd8] sm:$0xff] }
 0x1f6   : > { %v211_v55 = vld [vmem:[%s4286_s3 + $0xf8] sm:$0xff] }
 0x1f9   : > { %2399 = vmatmul.mubr.bf16.gmra.mrb[16].mxu0 %v3374_v16 }
 0x1fa   : > { %2448 = vmatpush1.bf16.xpose.msra.mxu0 %v3440_v9  ;;  %2408 = vmatprep.mubr.bf16.mxu0 %v3383_v15  ;;  %v343_v9 = vld [vmem:[#allocation5 + $0x318] sm:$0xff] }
 0x1fb   : > { %2851 = vmatmul.mubr.bf16.gmra.mrb[16].mxu1 %v3374_v16  ;;  %2449 = vmatprep.subr.bf16.mxu0 %v3449_v13  ;;  %v3616_v16 = vcombine.low %v455_v60, %v459_v61  ;;  %v471_v13 = vld [vmem:[#allocation5 + $0x718] sm:$0xff] }
 0x1fc   : > { %2900 = vmatpush1.bf16.xpose.msra.mxu1 %v3568_v10  ;;  %2860 = vmatprep.mubr.bf16.mxu1 %v3383_v15  ;;  %v347_v10 = vld [vmem:[#allocation5 + $0x338] sm:$0xff]  ;;  %v3496_v15 = vcombine.low %v335_v2, %v339_v3 }
 0x1fd   : > { %2901 = vmatprep.subr.bf16.mxu1 %v3577_v14  ;;  %v475_v14 = vld [vmem:[#allocation5 + $0x738] sm:$0xff]  ;;  %v3505_v18 = vcombine.high %v343_v9, %v347_v10 }
 0x1fe   : > { %v3633_v21 = vcombine.high %v471_v13, %v475_v14  ;;  %v227_v60 = vld [vmem:[%s4286_s3 + $0x178] sm:$0xff] }
 0x1ff   : > { %v239_v3 = vld [vmem:[%s4286_s3 + $0x1d8] sm:$0xff] }
 0x201   : > { %2409 = vmatmul.mubr.bf16.gmra.mrb[20].mxu0 %v3382_v23 }
 0x202   : > { %2450 = vmatpush1.bf16.xpose.msra.mxu0 %v3448_v48  ;;  %2418 = vmatprep.mubr.bf16.mxu0 %v3391_v29  ;;  %v3504_v48 = vcombine.low %v343_v9, %v347_v10 }
 0x203   : > { %2861 = vmatmul.mubr.bf16.gmra.mrb[20].mxu1 %v3382_v23  ;;  %2451 = vmatprep.subr.bf16.mxu0 %v3457_v27  ;;  %v355_v23 = vld [vmem:[#allocation5 + $0x378] sm:$0xff] }
 0x204   : > { %2902 = vmatpush1.bf16.xpose.msra.mxu1 %v3576_v26  ;;  %2870 = vmatprep.mubr.bf16.mxu1 %v3391_v29  ;;  %v3632_v26 = vcombine.low %v471_v13, %v475_v14  ;;  %v3513_v27 = vcombine.high %v351_v22, %v355_v23  ;;  %v359_v29 = vld [vmem:[#allocation5 + $0x398] sm:$0xff]  ;;  %v3512_v33 = vcombine.low %v351_v22, %v355_v23 }
 0x205   : > { %2903 = vmatprep.subr.bf16.mxu1 %v3585_v28  ;;  %v3641_v28 = vcombine.high %v479_v25, %v483_v47  ;;  %v3521_v36 = vcombine.high %v359_v29, %v363_v30 }
 0x209   : > { %2419 = vmatmul.mubr.bf16.gmra.mrb[24].mxu0 %v3390_v35 }
 0x20a   : > { %2452 = vmatpush1.bf16.xpose.msra.mxu0 %v3456_v34  ;;  %2428 = vmatprep.mubr.bf16.mxu0 %v3399_v41  ;;  %v367_v34 = vld [vmem:[#allocation5 + $0x3d8] sm:$0xff] }
 0x20b   : > { %2871 = vmatmul.mubr.bf16.gmra.mrb[24].mxu1 %v3390_v35  ;;  %2453 = vmatprep.subr.bf16.mxu0 %v3465_v39  ;;  %v3640_v35 = vcombine.low %v479_v25, %v483_v47  ;;  %v495_v39 = vld [vmem:[#allocation5 + $0x7d8] sm:$0xff] }
 0x20c   : > { %2904 = vmatpush1.bf16.xpose.msra.mxu1 %v3584_v38  ;;  %2880 = vmatprep.mubr.bf16.mxu1 %v3399_v41  ;;  %v371_v38 = vld [vmem:[#allocation5 + $0x3f8] sm:$0xff]  ;;  %v3520_v41 = vcombine.low %v359_v29, %v363_v30 }
 0x20d   : > { %2905 = vmatprep.subr.bf16.mxu1 %v3593_v40  ;;  %v499_v40 = vld [vmem:[#allocation5 + $0x7f8] sm:$0xff]  ;;  %v3529_v52 = vcombine.high %v367_v34, %v371_v38  ;;  %v3528_v44 = vcombine.low %v367_v34, %v371_v38 }
 0x20e   : > { %v3657_v43 = vcombine.high %v495_v39, %v499_v40 }
 0x211   : > { %2429 = vmatmul.mubr.bf16.gmra.mrb[28].mxu0 %v3398_v45 }
 0x212   : > { %2454 = vmatpush1.bf16.xpose.msra.mxu0 %v3464_v46  ;;  %2471 = vmatprep.mubr.bf16.mxu0 %v3345_v53  ;;  %v191_v46 = vld [vmem:[%s4286_s3 + $0x58] sm:$0xff] }
 0x213   : > { %2881 = vmatmul.mubr.bf16.gmra.mrb[28].mxu1 %v3398_v45  ;;  %2455 = vmatprep.subr.bf16.mxu0 %v3473_v50  ;;  %v3656_v45 = vcombine.low %v495_v39, %v499_v40 }
 0x214   : > { %2906 = vmatpush1.bf16.xpose.msra.mxu1 %v3592_v49  ;;  %2923 = vmatprep.mubr.bf16.mxu1 %v3345_v53  ;;  %v195_v49 = vld [vmem:[%s4286_s3 + $0x78] sm:$0xff] }
 0x215   : > { %2907 = vmatprep.subr.bf16.mxu1 %v3601_v51  ;;  %v3353_v50 = vcombine.high %v191_v46, %v195_v49  ;;  %v199_v51 = vld [vmem:[%s4286_s3 + $0x98] sm:$0xff]  ;;  %v3352_v11 = vcombine.low %v191_v46, %v195_v49 }
 0x216   : > { %v203_v53 = vld [vmem:[%s4286_s3 + $0xb8] sm:$0xff] }
 0x217   : > { %v3361_v12 = vcombine.high %v199_v51, %v203_v53 }
 0x21a   : > { %2456 = vmatpush1.bf16.xpose.msra.mxu0 %v3472_v56  ;;  %v3360_v56 = vcombine.low %v199_v51, %v203_v53 }
 0x21b   : > { %2457 = vmatprep.subr.bf16.mxu0 %v3481_v58  ;;  %v219_v58 = vld [vmem:[%s4286_s3 + $0x138] sm:$0xff] }
 0x21c   : > { %2908 = vmatpush1.bf16.xpose.msra.mxu1 %v3600_v57  ;;  %v3369_v57 = vcombine.high %v207_v54, %v211_v55 }
 0x21d   : > { %2909 = vmatprep.subr.bf16.mxu1 %v3609_v59  ;;  %v3368_v59 = vcombine.low %v207_v54, %v211_v55 }
 0x222   : > { %2458 = vmatpush1.bf16.xpose.msra.mxu0 %v3480_v62  ;;  %v3385_v62 = vcombine.high %v223_v20, %v227_v60 }
 0x223   : > { %2459 = vmatprep.subr.bf16.mxu0 %v3489_v0  ;;  %v235_v0 = vld [vmem:[%s4286_s3 + $0x1b8] sm:$0xff] }
 0x224   : > { %2910 = vmatpush1.bf16.xpose.msra.mxu1 %v3608_v63  ;;  %v231_v63 = vld [vmem:[%s4286_s3 + $0x198] sm:$0xff] }
 0x225   : > { %2911 = vmatprep.subr.bf16.mxu1 %v3617_v1  ;;  %v3384_v1 = vcombine.low %v223_v20, %v227_v60  ;;  %v3393_v2 = vcombine.high %v231_v63, %v235_v0  ;;  %v3392_v5 = vcombine.low %v231_v63, %v235_v0 }
 0x22a   : > { %2460 = vmatpush1.bf16.xpose.msra.mxu0 %v3488_v6  ;;  %v3401_v6 = vcombine.high %v239_v3, %v243_v4 }
 0x22b   : > { %2461 = vmatprep.subr.bf16.mxu0 %v3497_v7 }
 0x22c   : > { %2912 = vmatpush1.bf16.xpose.msra.mxu1 %v3616_v16  ;;  %v3400_v16 = vcombine.low %v239_v3, %v243_v4 }
 0x22d   : > { %2913 = vmatprep.subr.bf16.mxu1 %v3625_v8 }
 0x232   : > { %2462 = vmatpush1.bf16.xpose.msra.mxu0 %v3496_v15 }
 0x233   : > { %2463 = vmatprep.subr.bf16.mxu0 %v3505_v18 }
 0x234   : > { %2914 = vmatpush1.bf16.xpose.msra.mxu1 %v3624_v17 }
 0x235   : > { %2915 = vmatprep.subr.bf16.mxu1 %v3633_v21 }
 0x23a   : > { %2464 = vmatpush1.bf16.xpose.msra.mxu0 %v3504_v48 }
 0x23b   : > { %2465 = vmatprep.subr.bf16.mxu0 %v3513_v27 }
 0x23c   : > { %2916 = vmatpush1.bf16.xpose.msra.mxu1 %v3632_v26 }
 0x23d   : > { %2917 = vmatprep.subr.bf16.mxu1 %v3641_v28 }
 0x242   : > { %2466 = vmatpush1.bf16.xpose.msra.mxu0 %v3512_v33 }
 0x243   : > { %2467 = vmatprep.subr.bf16.mxu0 %v3521_v36 }
 0x244   : > { %2918 = vmatpush1.bf16.xpose.msra.mxu1 %v3640_v35 }
 0x245   : > { %2919 = vmatprep.subr.bf16.mxu1 %v3649_v37 }
 0x24a   : > { %2468 = vmatpush1.bf16.xpose.msra.mxu0 %v3520_v41 }
 0x24b   : > { %2469 = vmatprep.subr.bf16.mxu0 %v3529_v52 }
 0x24c   : > { %2920 = vmatpush1.bf16.xpose.msra.mxu1 %v3648_v42 }
 0x24d   : > { %2921 = vmatprep.subr.bf16.mxu1 %v3657_v43 }
 0x252   : > { %2470 = vmatpush1.bf16.xpose.msra.mxu0 %v3528_v44 }
 0x254   : > { %2922 = vmatpush1.bf16.xpose.msra.mxu1 %v3656_v45 }
 0x259   : > { %2472 = vmatmul.mubr.bf16.vlgmr.msra.gmra.mrb[0].mxu0 %v4364_v24 }
 0x25a   : > { %2481 = vmatprep.mubr.bf16.mxu0 %v3353_v50 }
 0x25b   : > { %2924 = vmatmul.mubr.bf16.vlgmr.msra.gmra.mrb[0].mxu1 %v4364_v24  ;;  %v215_v24 = vld [vmem:[%s4286_s3 + $0x118] sm:$0xff] }
 0x25c   : > { %2933 = vmatprep.mubr.bf16.mxu1 %v3353_v50  ;;  %v3377_v19 = vcombine.high %v215_v24, %v219_v58  ;;  %v3376_v61 = vcombine.low %v215_v24, %v219_v58 }
 0x261   : > { %2482 = vmatmul.mubr.bf16.gmra.mrb[4].mxu0 %v3352_v11 }
 0x262   : > { %2491 = vmatprep.mubr.bf16.mxu0 %v3361_v12 }
 0x263   : > { %2934 = vmatmul.mubr.bf16.gmra.mrb[4].mxu1 %v3352_v11 }
 0x264   : > { %2943 = vmatprep.mubr.bf16.mxu1 %v3361_v12 }
 0x269   : > { %2492 = vmatmul.mubr.bf16.gmra.mrb[8].mxu0 %v3360_v56 }
 0x26a   : > { %2501 = vmatprep.mubr.bf16.mxu0 %v3369_v57 }
 0x26b   : > { %2944 = vmatmul.mubr.bf16.gmra.mrb[8].mxu1 %v3360_v56 }
 0x26c   : > { %2953 = vmatprep.mubr.bf16.mxu1 %v3369_v57 }
 0x271   : > { %2502 = vmatmul.mubr.bf16.gmra.mrb[12].mxu0 %v3368_v59 }
 0x272   : > { %2511 = vmatprep.mubr.bf16.mxu0 %v3377_v19 }
 0x273   : > { %2954 = vmatmul.mubr.bf16.gmra.mrb[12].mxu1 %v3368_v59 }
 0x274   : > { %2963 = vmatprep.mubr.bf16.mxu1 %v3377_v19 }
 0x279   : > { %2512 = vmatmul.mubr.bf16.gmra.mrb[16].mxu0 %v3376_v61 }
 0x27a   : > { %2521 = vmatprep.mubr.bf16.mxu0 %v3385_v62 }
 0x27b   : > { %2964 = vmatmul.mubr.bf16.gmra.mrb[16].mxu1 %v3376_v61 }
 0x27c   : > { %2973 = vmatprep.mubr.bf16.mxu1 %v3385_v62 }
 0x281   : > { %2522 = vmatmul.mubr.bf16.gmra.mrb[20].mxu0 %v3384_v1 }
 0x282   : > { %2531 = vmatprep.mubr.bf16.mxu0 %v3393_v2 }
 0x283   : > { %2974 = vmatmul.mubr.bf16.gmra.mrb[20].mxu1 %v3384_v1 }
 0x284   : > { %2983 = vmatprep.mubr.bf16.mxu1 %v3393_v2 }
 0x289   : > { %2532 = vmatmul.mubr.bf16.gmra.mrb[24].mxu0 %v3392_v5 }
 0x28a   : > { %2541 = vmatprep.mubr.bf16.mxu0 %v3401_v6 }
 0x28b   : > { %2984 = vmatmul.mubr.bf16.gmra.mrb[24].mxu1 %v3392_v5 }
 0x28c   : > { %2993 = vmatprep.mubr.bf16.mxu1 %v3401_v6 }
 0x291   : > { %2542 = vmatmul.mubr.bf16.gmra.mrb[28].mxu0 %v3400_v16 }
 0x293   : > { %2994 = vmatmul.mubr.bf16.gmra.mrb[28].mxu1 %v3400_v16 }
 0x32c   : > { %v2473_v7 = vpop.f32.mrb[0].mxu0 }
 0x32d   : > { %v2475_v9 = vpop.f32.mrb[1].mxu0 }
 0x32e   : > { %v2925_v8 = vpop.f32.mrb[0].mxu1  ;;  %v3698_v10 = vpack.c.bf16 %v2475_v9, %v2473_v7  ;;  %v2477_v14 = vpop.f32.mrb[2].mxu0 }
 0x32f   : > { %v2927_v13 = vpop.f32.mrb[1].mxu1  ;;  %v2479_v18 = vpop.f32.mrb[3].mxu0 }
 0x330   : > { %v3699_v15 = vpack.c.bf16 %v2927_v13, %v2925_v8  ;;  %v2929_v17 = vpop.f32.mrb[2].mxu1  ;;  %3196 = vst [vmem:[%s4401_s17] sm:$0xff] %v3698_v10  ;;  %v3700_v21 = vpack.c.bf16 %v2479_v18, %v2477_v14 }
 0x331   : > { %v2931_v22 = vpop.f32.mrb[3].mxu1 }
 0x332   : > { %3197 = vst [vmem:[%s4401_s17 + $0x8] sm:$0xff] %v3699_v15  ;;  %v3701_v23 = vpack.c.bf16 %v2931_v22, %v2929_v17  ;;  %3198 = vst [vmem:[%s4401_s17 + $0x10] sm:$0xff] %v3700_v21 }
 0x334   : > { %3199 = vst [vmem:[%s4401_s17 + $0x18] sm:$0xff] %v3701_v23  ;;  %v2483_v25 = vpop.f32.mrb[4].mxu0 }
 0x335   : > { %v2485_v48 = vpop.f32.mrb[5].mxu0 }
 0x336   : > { %v2935_v47 = vpop.f32.mrb[4].mxu1  ;;  %v3702_v26 = vpack.c.bf16 %v2485_v48, %v2483_v25  ;;  %v2487_v28 = vpop.f32.mrb[6].mxu0 }
 0x337   : > { %v2937_v27 = vpop.f32.mrb[5].mxu1  ;;  %v2489_v31 = vpop.f32.mrb[7].mxu0 }
 0x338   : > { %v3703_v29 = vpack.c.bf16 %v2937_v27, %v2935_v47  ;;  %v2939_v30 = vpop.f32.mrb[6].mxu1  ;;  %3200 = vst [vmem:[%s4401_s17 + $0x20] sm:$0xff] %v3702_v26  ;;  %v3704_v32 = vpack.c.bf16 %v2489_v31, %v2487_v28 }
 0x339   : > { %v2941_v33 = vpop.f32.mrb[7].mxu1 }
 0x33a   : > { %3201 = vst [vmem:[%s4401_s17 + $0x28] sm:$0xff] %v3703_v29  ;;  %v3705_v35 = vpack.c.bf16 %v2941_v33, %v2939_v30  ;;  %3202 = vst [vmem:[%s4401_s17 + $0x30] sm:$0xff] %v3704_v32 }
 0x33c   : > { %3203 = vst [vmem:[%s4401_s17 + $0x38] sm:$0xff] %v3705_v35  ;;  %v2493_v36 = vpop.f32.mrb[8].mxu0 }
 0x33d   : > { %v2495_v34 = vpop.f32.mrb[9].mxu0 }
 0x33e   : > { %v2945_v37 = vpop.f32.mrb[8].mxu1  ;;  %v3706_v38 = vpack.c.bf16 %v2495_v34, %v2493_v36  ;;  %v2497_v40 = vpop.f32.mrb[10].mxu0 }
 0x33f   : > { %v2947_v39 = vpop.f32.mrb[9].mxu1  ;;  %v2499_v52 = vpop.f32.mrb[11].mxu0 }
 0x340   : > { %v3707_v41 = vpack.c.bf16 %v2947_v39, %v2945_v37  ;;  %v2949_v42 = vpop.f32.mrb[10].mxu1  ;;  %3204 = vst [vmem:[%s4401_s17 + $0x40] sm:$0xff] %v3706_v38  ;;  %v3708_v43 = vpack.c.bf16 %v2499_v52, %v2497_v40 }
 0x341   : > { %v2951_v44 = vpop.f32.mrb[11].mxu1 }
 0x342   : > { %3205 = vst [vmem:[%s4401_s17 + $0x48] sm:$0xff] %v3707_v41  ;;  %v3709_v45 = vpack.c.bf16 %v2951_v44, %v2949_v42  ;;  %3206 = vst [vmem:[%s4401_s17 + $0x50] sm:$0xff] %v3708_v43 }
 0x344   : > { %3207 = vst [vmem:[%s4401_s17 + $0x58] sm:$0xff] %v3709_v45  ;;  %v2503_v46 = vpop.f32.mrb[12].mxu0 }
 0x345   : > { %v2505_v50 = vpop.f32.mrb[13].mxu0 }
 0x346   : > { %v2955_v49 = vpop.f32.mrb[12].mxu1  ;;  %v3710_v51 = vpack.c.bf16 %v2505_v50, %v2503_v46  ;;  %v2507_v11 = vpop.f32.mrb[14].mxu0 }
 0x347   : > { %v2957_v53 = vpop.f32.mrb[13].mxu1  ;;  %v2509_v55 = vpop.f32.mrb[15].mxu0 }
 0x348   : > { %v3711_v12 = vpack.c.bf16 %v2957_v53, %v2955_v49  ;;  %v2959_v54 = vpop.f32.mrb[14].mxu1  ;;  %3208 = vst [vmem:[%s4401_s17 + $0x60] sm:$0xff] %v3710_v51  ;;  %v3712_v56 = vpack.c.bf16 %v2509_v55, %v2507_v11 }
 0x349   : > { %v2961_v57 = vpop.f32.mrb[15].mxu1 }
 0x34a   : > { %3209 = vst [vmem:[%s4401_s17 + $0x68] sm:$0xff] %v3711_v12  ;;  %v3713_v24 = vpack.c.bf16 %v2961_v57, %v2959_v54  ;;  %3210 = vst [vmem:[%s4401_s17 + $0x70] sm:$0xff] %v3712_v56 }
 0x34c   : > { %3211 = vst [vmem:[%s4401_s17 + $0x78] sm:$0xff] %v3713_v24  ;;  %v2513_v58 = vpop.f32.mrb[16].mxu0 }
 0x34d   : > { %v2515_v19 = vpop.f32.mrb[17].mxu0 }
 0x34e   : > { %v2965_v59 = vpop.f32.mrb[16].mxu1  ;;  %v3714_v20 = vpack.c.bf16 %v2515_v19, %v2513_v58  ;;  %v2517_v61 = vpop.f32.mrb[18].mxu0 }
 0x34f   : > { %v2967_v60 = vpop.f32.mrb[17].mxu1  ;;  %v2519_v0 = vpop.f32.mrb[19].mxu0 }
 0x350   : > { %v3715_v62 = vpack.c.bf16 %v2967_v60, %v2965_v59  ;;  %v2969_v63 = vpop.f32.mrb[18].mxu1  ;;  %3212 = vst [vmem:[%s4401_s17 + $0x80] sm:$0xff] %v3714_v20  ;;  %v3716_v1 = vpack.c.bf16 %v2519_v0, %v2517_v61 }
 0x351   : > { %v2971_v2 = vpop.f32.mrb[19].mxu1 }
 0x352   : > { %3213 = vst [vmem:[%s4401_s17 + $0x88] sm:$0xff] %v3715_v62  ;;  %v3717_v3 = vpack.c.bf16 %v2971_v2, %v2969_v63  ;;  %3214 = vst [vmem:[%s4401_s17 + $0x90] sm:$0xff] %v3716_v1 }
 0x354   : > { %3215 = vst [vmem:[%s4401_s17 + $0x98] sm:$0xff] %v3717_v3  ;;  %v2523_v4 = vpop.f32.mrb[20].mxu0 }
 0x355   : > { %v2525_v6 = vpop.f32.mrb[21].mxu0 }
 0x356   : > { %v2975_v5 = vpop.f32.mrb[20].mxu1  ;;  %v3718_v16 = vpack.c.bf16 %v2525_v6, %v2523_v4  ;;  %v2527_v8 = vpop.f32.mrb[22].mxu0 }
 0x357   : > { %v2977_v7 = vpop.f32.mrb[21].mxu1  ;;  %v2529_v13 = vpop.f32.mrb[23].mxu0 }
 0x358   : > { %v3719_v9 = vpack.c.bf16 %v2977_v7, %v2975_v5  ;;  %v2979_v10 = vpop.f32.mrb[22].mxu1  ;;  %3216 = vst [vmem:[%s4401_s17 + $0xa0] sm:$0xff] %v3718_v16  ;;  %v3720_v14 = vpack.c.bf16 %v2529_v13, %v2527_v8 }
 0x359   : > { %v2981_v15 = vpop.f32.mrb[23].mxu1 }
 0x35a   : > { %3217 = vst [vmem:[%s4401_s17 + $0xa8] sm:$0xff] %v3719_v9  ;;  %v3721_v17 = vpack.c.bf16 %v2981_v15, %v2979_v10  ;;  %3218 = vst [vmem:[%s4401_s17 + $0xb0] sm:$0xff] %v3720_v14 }
 0x35c   : > { %3219 = vst [vmem:[%s4401_s17 + $0xb8] sm:$0xff] %v3721_v17  ;;  %v2533_v18 = vpop.f32.mrb[24].mxu0 }
 0x35d   : > { %v2535_v22 = vpop.f32.mrb[25].mxu0 }
 0x35e   : > { %v2985_v21 = vpop.f32.mrb[24].mxu1  ;;  %v3722_v23 = vpack.c.bf16 %v2535_v22, %v2533_v18  ;;  %v2537_v47 = vpop.f32.mrb[26].mxu0 }
 0x35f   : > { %v2987_v25 = vpop.f32.mrb[25].mxu1  ;;  %v2539_v27 = vpop.f32.mrb[27].mxu0 }
 0x360   : > { %v3723_v48 = vpack.c.bf16 %v2987_v25, %v2985_v21  ;;  %v2989_v26 = vpop.f32.mrb[26].mxu1  ;;  %3220 = vst [vmem:[%s4401_s17 + $0xc0] sm:$0xff] %v3722_v23  ;;  %v3724_v28 = vpack.c.bf16 %v2539_v27, %v2537_v47 }
 0x361   : > { %v2991_v29 = vpop.f32.mrb[27].mxu1 }
 0x362   : > { %3221 = vst [vmem:[%s4401_s17 + $0xc8] sm:$0xff] %v3723_v48  ;;  %v3725_v30 = vpack.c.bf16 %v2991_v29, %v2989_v26  ;;  %3222 = vst [vmem:[%s4401_s17 + $0xd0] sm:$0xff] %v3724_v28 }
 0x364   : > { %3223 = vst [vmem:[%s4401_s17 + $0xd8] sm:$0xff] %v3725_v30  ;;  %v2543_v31 = vpop.f32.mrb[28].mxu0 }
 0x365   : > { %v2545_v33 = vpop.f32.mrb[29].mxu0 }
 0x366   : > { %v2995_v32 = vpop.f32.mrb[28].mxu1  ;;  %v3726_v35 = vpack.c.bf16 %v2545_v33, %v2543_v31  ;;  %v2547_v37 = vpop.f32.mrb[30].mxu0 }
 0x367   : > { %v2997_v36 = vpop.f32.mrb[29].mxu1  ;;  %v2549_v39 = vpop.f32.mrb[31].mxu0 }
 0x368   : > { %v3727_v34 = vpack.c.bf16 %v2997_v36, %v2995_v32  ;;  %v2999_v38 = vpop.f32.mrb[30].mxu1  ;;  %3224 = vst [vmem:[%s4401_s17 + $0xe0] sm:$0xff] %v3726_v35  ;;  %v3728_v40 = vpack.c.bf16 %v2549_v39, %v2547_v37 }
 0x369   : > { %v3001_v41 = vpop.f32.mrb[31].mxu1 }
 0x36a   : > { %3225 = vst [vmem:[%s4401_s17 + $0xe8] sm:$0xff] %v3727_v34  ;;  %v3729_v42 = vpack.c.bf16 %v3001_v41, %v2999_v38  ;;  %3226 = vst [vmem:[%s4401_s17 + $0xf0] sm:$0xff] %v3728_v40 }
 0x36c   : > { %3227 = vst [vmem:[%s4401_s17 + $0xf8] sm:$0xff] %v3729_v42 }
 0x36d   : > { %4056 = shalt.err (!%p4053_p7)
}
 0x36e   : > { %s4057_s18 = scalar_lea.hbm %s4437_s23, 4096  ;;  %s4061_s26 = scalar_lea.hbm %s4488_s2, 8192 }
 0x36f   : > { %p4058_p9 = scmp.ne.s32.totalorder %s4437_s23, %s4057_s18  ;;  %p4062_p5 = scmp.lt.u32.totalorder %s4437_s23, %s4488_s2 }
 0x370   : > { %p4063_p11 = scmp.lt.u32.totalorder %s4061_s26, %s4057_s18  ;;  %p4065_p4 = scmp.lt.u32.totalorder %s4057_s18, %s4437_s23 }
 0x371   : > { %p4059_p1 = pnand %p4058_p9, %p4231_p12 }
 0x372   : > { %p4064_p2 = por %p4063_p11, %p4062_p5 }
 0x373   : > { %p4060_p0 = pneg %p4059_p1 }
 0x374   : > { %p4066_p6 = por %p4065_p4, %p4064_p2 }
 0x376   : > { %p4067_p8 = pnand %p4066_p6, %p4060_p0 }
 0x378   : > { %4070 = shalt.err (!%p4067_p8)
}
 0x379   : > { %s4120_s3 = smov 256   ;;  %s4121_s15 = smov 16  }
 0x37a   : > { %3930 = dma.vmem_to_hbm [thread:$0]  (%p4231_p12), %s4439_s5, 4096, %s4437_s23, %s3229_s13, %s4120_s3, %s4120_s3, %s4121_s15  }
 0x37b PF: > { %s3258_s17 = sand.u32 1, %s4101_s9   ;;  %p4503_p10 = scmp.ne.s32.totalorder %s4493_s16, 0 }
 0x37c   : > { %p4504_p13 = scmp.ge.s32.totalorder %s4113_s12, 2  ;;  %s3259_s4 = scalar_lea.sflag [#allocation4], %s3258_s17 }
 0x37e   : > { %p3941_p3 = pnand %p4504_p13, %p4503_p10 }
 0x380   : > { %4096 = dma.done.wait (!%p3941_p3), %s3259_s4, 4096  }
 0x381   : > { %4098 = vsyncadd (!%p3941_p3), %s3259_s4, 4294963200  ;;  %p16_p7 = scmp.ge.s32.totalorder %s4193_s21, 4   ;;  %s4505_s9 = smov %s4105_s10 }
 0x382   : > { %s4506_s10 = smov %s4109_s11  ;;  %s4507_s11 = smov %s4227_s8 }
 0x383   : > { %s4508_s12 = smov %s4193_s21  ;;  %18 = sbr.rel (!%p16_p7) target bundleno = 6 (0x6), region = 77 }
 0x38a   :  { %3264 = vsyncpa [#allocation3], 1 }
 0x38b   :  { %3266 = vsyncpa [#allocation3 + $0x1], 1 }
 0x38c   :  { %3267 = vsyncpa [#allocation6], 1 }
 0x38d   :  { %3268 = vsyncpa [#allocation4], 1 }
 0x38e   :  { %3270 = vsyncpa [#allocation4 + $0x1], 1 }

</bundles_post_ra>
